<compile_context>
chip_gen: v5e
topology: v5e:2x2
jax: 0.10.0
libtpu: 0.0.40
codegen_flags: <defaults>
</compile_context>

<pallas_src>
import functools

import jax
import jax.numpy as jnp
from jax.experimental import pallas as pl
from jax.experimental.pallas import tpu as pltpu


# ---------------------------------------------------------------------------
# hardware query / tiling helpers
# ---------------------------------------------------------------------------
def _tpu_vmem_bytes():
    try:
        return int(getattr(pltpu.get_tpu_info(), "vmem_capacity_bytes", 128 * 1024 * 1024))
    except Exception:
        return 128 * 1024 * 1024


def _fit_tile(t, n):
    t = min(t, n)
    while t > 8 and n % t:
        t //= 2
    return t


def _pick_tiles(n, num_heads, vmem_bytes):
    """tq/tn grow with VMEM capacity; tkv is capped so the live f32 score/prob
    intermediates (~H*tq*tkv*4 B) stay <= ~2 MiB (the real constraint, not VMEM capacity)."""
    big = vmem_bytes >= 100 * 1024 * 1024
    tq = 512 if big else 256
    tkv = 256
    while num_heads * tq * tkv * 4 > 2 * 1024 * 1024 and tkv > 128:
        tkv //= 2
    return _fit_tile(tq, n), _fit_tile(tkv, n)


def _const_spec(shape, single_buffer):
    """BlockSpec for a grid-invariant (weight / bias / LN) operand."""
    idx = lambda *args: (0,) * len(shape)
    if single_buffer:
        # constant index_map -> one VMEM buffer is enough; halves constant-operand VMEM on v7x.
        try:
            return pl.BlockSpec(shape, idx, pipeline_mode=pl.Buffered(1))
        except Exception:
            pass
    return pl.BlockSpec(shape, idx)


# ---------------------------------------------------------------------------
# shared in-kernel helpers
# ---------------------------------------------------------------------------
def _pos_embed(qp, w1_ref, b1_ref, bns_ref, bnt_ref, w2_ref, b2_ref, t, E):
    """PositionEmbeddingLearned: Conv1d(k=1) -> folded eval BatchNorm1d -> ReLU -> Conv1d(k=1).
    First conv has K = Cin (tiny): done as Cin broadcast-FMAs on the VPU in f32."""
    w1 = w1_ref[...]                                              # (Cin, E) f32
    hid = jnp.zeros((t, E), jnp.float32) + b1_ref[...]
    for c in range(qp.shape[1]):                                  # static, Cin small
        hid = hid + qp[:, c:c + 1] * w1[c:c + 1, :]
    hid = jnp.maximum(hid * bns_ref[...] + bnt_ref[...], 0.0)     # folded eval BN + ReLU
    return jnp.dot(hid.astype(jnp.bfloat16), w2_ref[...],
                   preferred_element_type=jnp.float32) + b2_ref[...]


def _layernorm(x, gamma, beta, eps=1e-5):
    mu = jnp.mean(x, axis=-1, keepdims=True)
    xc = x - mu
    var = jnp.mean(xc * xc, axis=-1, keepdims=True)
    return xc * jax.lax.rsqrt(var + eps) * gamma + beta


# ---------------------------------------------------------------------------
# Kernel 1: PositionEmbeddingLearned + K/V projections -> lane-dense (B, N, 2E) bf16 slab
# ---------------------------------------------------------------------------
def _kv_proj_kernel(x_ref, qp_ref, w1_ref, b1_ref, bns_ref, bnt_ref, w2_ref, b2_ref,
                    wk_ref, bk_ref, wv_ref, bv_ref, kv_ref):
    x = x_ref[0]                                                  # (tn, E) f32
    t, E = x.shape
    pos = _pos_embed(qp_ref[0], w1_ref, b1_ref, bns_ref, bnt_ref, w2_ref, b2_ref, t, E)
    # mmcv MultiheadAttention: k = query + query_pos, v = query.
    k = jnp.dot((x + pos).astype(jnp.bfloat16), wk_ref[...],
                preferred_element_type=jnp.float32) + bk_ref[...]
    v = jnp.dot(x.astype(jnp.bfloat16), wv_ref[...],
                preferred_element_type=jnp.float32) + bv_ref[...]
    # one lane-dense (tn, 2E) slab -> a single unmasked full-lane store
    kv_ref[0] = jnp.concatenate([k.astype(kv_ref.dtype), v.astype(kv_ref.dtype)], axis=1)


def _kv_proj_forward(x, query_pos, p, tn, vmem_limit, single_buffer):
    B, N, E = x.shape
    cin = query_pos.shape[-1]
    cs = lambda s: _const_spec(s, single_buffer)
    return pl.pallas_call(
        _kv_proj_kernel,
        out_shape=jax.ShapeDtypeStruct((B, N, 2 * E), jnp.bfloat16),
        grid=(B, N // tn),
        in_specs=[
            pl.BlockSpec((1, tn, E), lambda b, i: (b, i, 0)),
            pl.BlockSpec((1, tn, cin), lambda b, i: (b, i, 0)),
            cs((cin, E)), cs((1, E)), cs((1, E)), cs((1, E)),     # posembed conv1 + folded BN
            cs((E, E)), cs((1, E)),                               # posembed conv2
            cs((E, E)), cs((1, E)),                               # K proj
            cs((E, E)), cs((1, E)),                               # V proj
        ],
        out_specs=pl.BlockSpec((1, tn, 2 * E), lambda b, i: (b, i, 0)),
        compiler_params=pltpu.CompilerParams(
            dimension_semantics=("parallel", "parallel"),
            vmem_limit_bytes=vmem_limit),
    )(x, query_pos, p["w1"], p["b1"], p["bn_scale"], p["bn_shift"], p["w2"], p["b2"],
      p["wk"], p["bk"], p["wv"], p["bv"])


# ---------------------------------------------------------------------------
# Kernel 2: Q proj (per q-tile) + flash-style self-attention + out-proj + LN + FFN + LN
#   grid (B, q-tiles, kv-tiles); kv axis is the online-softmax accumulation axis.
# ---------------------------------------------------------------------------
def _attn_ffn_kernel(x_ref, qp_ref, kv_ref,
                     w1_ref, b1_ref, bns_ref, bnt_ref, w2_ref, b2_ref,
                     wq_ref, bq_ref, wo_ref, bo_ref, g1_ref, be1_ref,
                     wf1_ref, bf1_ref, wf2_ref, bf2_ref, g2_ref, be2_ref,
                     o_ref, q_sc, m_sc, l_sc, acc_sc, *, num_heads, sm_scale):
    ki = pl.program_id(2)
    H = num_heads
    tq, dh = q_sc.shape[1], q_sc.shape[2]
    E = H * dh

    @pl.when(ki == 0)
    def _init():
        # Q projection once per q-tile: no HBM round trip for Q; softmax scale folded into Q.
        x = x_ref[0]                                              # (tq, E) f32
        pos = _pos_embed(qp_ref[0], w1_ref, b1_ref, bns_ref, bnt_ref, w2_ref, b2_ref, tq, E)
        q = jnp.dot((x + pos).astype(jnp.bfloat16), wq_ref[...],
                    preferred_element_type=jnp.float32) + bq_ref[...]
        q = q * sm_scale
        for h in range(H):                 # head split: static, aligned lane slices into scratch
            q_sc[h] = q[:, h * dh:(h + 1) * dh].astype(q_sc.dtype)
        m_sc[...] = jnp.full(m_sc.shape, -jnp.inf, m_sc.dtype)
        l_sc[...] = jnp.zeros(l_sc.shape, l_sc.dtype)
        acc_sc[...] = jnp.zeros(acc_sc.shape, acc_sc.dtype)

    kv = kv_ref[0]                                                # (tkv, 2E) bf16, lane-dense
    for h in range(H):                                            # static unroll, H small
        lo = h * dh
        k_h = kv[:, lo:lo + dh]                                   # (tkv, dh)
        v_h = kv[:, E + lo:E + lo + dh]                           # (tkv, dh)
        s = jnp.einsum("qd,kd->qk", q_sc[h], k_h,
                       preferred_element_type=jnp.float32)        # (tq, tkv) f32
        m_prev = m_sc[h]
        m_new = jnp.maximum(m_prev, s.max(-1, keepdims=True))
        alpha = jnp.exp(m_prev - m_new)
        pr = jnp.exp(s - m_new)
        l_sc[h] = alpha * l_sc[h] + pr.sum(-1, keepdims=True)
        acc_sc[h] = alpha * acc_sc[h] + jnp.dot(pr.astype(jnp.bfloat16), v_h,
                                                preferred_element_type=jnp.float32)
        m_sc[h] = m_new

    @pl.when(ki == pl.num_programs(2) - 1)
    def _finalize():
        # Normalize per head (EUP reciprocal), concat heads to a lane-dense (tq, E) value, then
        # ONE full-contraction (K = E) output projection instead of H small K = dh matmuls.
        attn = jnp.concatenate(
            [acc_sc[h] * pl.reciprocal(l_sc[h], approx=True) for h in range(H)],
            axis=1).astype(jnp.bfloat16)
        out = jnp.dot(attn, wo_ref[...], preferred_element_type=jnp.float32) + bo_ref[...]
        x = x_ref[0]
        x1 = _layernorm(x + out, g1_ref[...], be1_ref[...])       # residual = query
        f = jnp.dot(x1.astype(jnp.bfloat16), wf1_ref[...],
                    preferred_element_type=jnp.float32) + bf1_ref[...]
        f = jnp.maximum(f, 0.0)
        # TODO(synk): for very large FF on v7x, tile the FFN hidden dim with an accumulating loop.
        f = jnp.dot(f.astype(jnp.bfloat16), wf2_ref[...],
                    preferred_element_type=jnp.float32) + bf2_ref[...]
        o_ref[0] = _layernorm(x1 + f, g2_ref[...], be2_ref[...]).astype(o_ref.dtype)


def _attention_ffn_forward(x, query_pos, kv, p, num_heads, tq, tkv, vmem_limit, single_buffer):
    B, N, E = x.shape
    cin = query_pos.shape[-1]
    dh = E // num_heads
    FF = p["w_ff1"].shape[1]
    cs = lambda s: _const_spec(s, single_buffer)
    return pl.pallas_call(
        functools.partial(_attn_ffn_kernel, num_heads=num_heads, sm_scale=1.0 / (dh ** 0.5)),
        out_shape=jax.ShapeDtypeStruct((B, N, E), jnp.float32),
        grid=(B, N // tq, N // tkv),
        in_specs=[
            pl.BlockSpec((1, tq, E), lambda b, qi, ki: (b, qi, 0)),
            pl.BlockSpec((1, tq, cin), lambda b, qi, ki: (b, qi, 0)),
            pl.BlockSpec((1, tkv, 2 * E), lambda b, qi, ki: (b, ki, 0)),
            cs((cin, E)), cs((1, E)), cs((1, E)), cs((1, E)),     # posembed conv1 + folded BN
            cs((E, E)), cs((1, E)),                               # posembed conv2
            cs((E, E)), cs((1, E)),                               # Q proj
            cs((E, E)), cs((1, E)),                               # out proj
            cs((1, E)), cs((1, E)),                               # LN1
            cs((E, FF)), cs((1, FF)),                             # FFN 1
            cs((FF, E)), cs((1, E)),                              # FFN 2
            cs((1, E)), cs((1, E)),                               # LN2
        ],
        out_specs=pl.BlockSpec((1, tq, E), lambda b, qi, ki: (b, qi, 0)),
        scratch_shapes=[
            pltpu.VMEM((num_heads, tq, dh), jnp.bfloat16),        # Q (head-major, scale folded)
            pltpu.VMEM((num_heads, tq, 1), jnp.float32),          # running max
            pltpu.VMEM((num_heads, tq, 1), jnp.float32),          # running denominator
            pltpu.VMEM((num_heads, tq, dh), jnp.float32),         # running numerator
        ],
        compiler_params=pltpu.CompilerParams(
            dimension_semantics=("parallel", "parallel", "arbitrary"),
            vmem_limit_bytes=vmem_limit),
    )(x, query_pos, kv, p["w1"], p["b1"], p["bn_scale"], p["bn_shift"], p["w2"], p["b2"],
      p["wq"], p["bq"], p["wo"], p["bo"], p["ln1_g"], p["ln1_b"],
      p["w_ff1"], p["b_ff1"], p["w_ff2"], p["b_ff2"], p["ln2_g"], p["ln2_b"])


# ---------------------------------------------------------------------------
# Module wrapper + deterministic parameter init
# ---------------------------------------------------------------------------
def init_params(key, cin, embed, ff):
    E = embed
    f32, bf16 = jnp.float32, jnp.bfloat16
    ks = jax.random.split(key, 18)
    w = lambda k, s: 0.05 * jax.random.normal(k, s, f32)

    # PositionEmbeddingLearned (BatchNorm folded with running stats -> scale/shift)
    gamma = 1.0 + 0.1 * jax.random.normal(ks[2], (1, E), f32)
    beta = 0.1 * jax.random.normal(ks[3], (1, E), f32)
    rmean = 0.1 * jax.random.normal(ks[4], (1, E), f32)
    rvar = 1.0 + 0.1 * jnp.abs(jax.random.normal(ks[5], (1, E), f32))
    bn_scale = gamma / jnp.sqrt(rvar + 1e-5)
    bn_shift = beta - rmean * bn_scale

    return dict(
        # posembed head
        w1=w(ks[0], (cin, E)), b1=w(ks[1], (1, E)),
        bn_scale=bn_scale, bn_shift=bn_shift,
        w2=w(ks[6], (E, E)).astype(bf16), b2=w(ks[7], (1, E)),
        # attention projections: bf16 weights for the MXU, f32 biases
        wq=w(ks[8], (E, E)).astype(bf16), bq=w(ks[9], (1, E)),
        wk=w(ks[10], (E, E)).astype(bf16), bk=w(ks[11], (1, E)),
        wv=w(ks[12], (E, E)).astype(bf16), bv=w(ks[13], (1, E)),
        wo=w(ks[14], (E, E)).astype(bf16), bo=jnp.zeros((1, E), f32),
        ln1_g=jnp.ones((1, E), f32), ln1_b=jnp.zeros((1, E), f32),
        # FFN
        w_ff1=w(ks[15], (E, ff)).astype(bf16), b_ff1=jnp.zeros((1, ff), f32),
        w_ff2=w(ks[16], (ff, E)).astype(bf16), b_ff2=jnp.zeros((1, E), f32),
        ln2_g=jnp.ones((1, E), f32), ln2_b=jnp.zeros((1, E), f32),
    )


class TransformerDecoderLayerWithPos:
    """Inference-mode port of the PyTorch module (self_attn -> norm -> ffn -> norm)."""

    def __init__(self, params, num_heads, tile_n=None, tile_q=None, tile_kv=None,
                 single_buffer_weights=None):
        self.params = params
        self.num_heads = num_heads
        vmem = _tpu_vmem_bytes()
        self._vmem = vmem
        self.vmem_limit = int(min(vmem * 3 // 4, 96 * 1024 * 1024))   # 96 MiB (128 MiB parts) / 48 MiB (v7x)
        # single-buffer constant weight operands only on small-VMEM parts (v7x)
        self.single_buffer = (vmem < 100 * 1024 * 1024
                              if single_buffer_weights is None else single_buffer_weights)
        self.tile_n = tile_n
        self.tile_q = tile_q
        self.tile_kv = tile_kv

    def forward(self, query, query_pos, reference_points, valid_ratios):
        p = self.params
        # reference-points scaling: trivially mem-bound broadcast with a 2/4-wide lane dim;
        # plain XLA (a pallas_call would only add launch overhead + masked partial stores).
        if reference_points.shape[-1] == 4:
            vr = jnp.concatenate([valid_ratios, valid_ratios], axis=-1)
        else:
            assert reference_points.shape[-1] == 2
            vr = valid_ratios
        reference_points_input = reference_points[:, :, None, :] * vr[:, None, :, :]

        N, B, E = query.shape
        assert E % self.num_heads == 0
        # TODO(synk): the (N,B,E)<->(B,N,E) transposes are kept only for interface parity with
        # the PyTorch module; drop them if the surrounding graph already runs batch-major.
        x = jnp.transpose(query, (1, 0, 2))            # (B, N, E), channels on lanes

        dtq, dtkv = _pick_tiles(N, self.num_heads, self._vmem)
        tq = self.tile_q if self.tile_q is not None else dtq
        tkv = self.tile_kv if self.tile_kv is not None else dtkv
        tn = self.tile_n if self.tile_n is not None else tq
        assert N % tn == 0 and N % tq == 0 and N % tkv == 0

        def run(single_buffer):
            kv = _kv_proj_forward(x, query_pos, p, tn, self.vmem_limit, single_buffer)
            return _attention_ffn_forward(x, query_pos, kv, p, self.num_heads,
                                          tq, tkv, self.vmem_limit, single_buffer)

        if self.single_buffer:
            try:
                out = run(True)
            except Exception:      # pl.Buffered(1) unsupported -> default double buffering
                out = run(False)
        else:
            out = run(False)
        return jnp.transpose(out, (1, 0, 2)), reference_points_input   # back to (N, B, E)


# ---------------------------------------------------------------------------
# Pure-JAX (f32) reference of the same inference-mode layer
# ---------------------------------------------------------------------------
def _reference_forward(query, query_pos, p, num_heads):
    f32 = jnp.float32
    x = jnp.transpose(query, (1, 0, 2)).astype(f32)        # (B, N, E)
    B, N, E = x.shape
    dh = E // num_heads

    hid = query_pos @ p["w1"] + p["b1"]
    hid = jnp.maximum(hid * p["bn_scale"] + p["bn_shift"], 0.0)
    pos = hid @ p["w2"].astype(f32) + p["b2"]

    q = (x + pos) @ p["wq"].astype(f32) + p["bq"]
    k = (x + pos) @ p["wk"].astype(f32) + p["bk"]
    v = x @ p["wv"].astype(f32) + p["bv"]

    def split(t):  # (B, N, E) -> (B, H, N, dh)
        return t.reshape(B, N, num_heads, dh).transpose(0, 2, 1, 3)

    qh, kh, vh = split(q), split(k), split(v)
    s = jnp.einsum("bhqd,bhkd->bhqk", qh, kh) / (dh ** 0.5)
    pr = jax.nn.softmax(s, axis=-1)
    attn = jnp.einsum("bhqk,bhkd->bhqd", pr, vh).transpose(0, 2, 1, 3).reshape(B, N, E)
    attn = attn @ p["wo"].astype(f32) + p["bo"]

    def ln(z, g, b):
        mu = z.mean(-1, keepdims=True)
        var = ((z - mu) ** 2).mean(-1, keepdims=True)
        return (z - mu) * jax.lax.rsqrt(var + 1e-5) * g + b

    x1 = ln(x + attn, p["ln1_g"], p["ln1_b"])
    f = jnp.maximum(x1 @ p["w_ff1"].astype(f32) + p["b_ff1"], 0.0)
    f = f @ p["w_ff2"].astype(f32) + p["b_ff2"]
    out = ln(x1 + f, p["ln2_g"], p["ln2_b"])
    return jnp.transpose(out, (1, 0, 2))


if __name__ == "__main__":
    # lane-dense small demo: E = 128 (full vreg lanes), N = 256 with 128-tiles so the kv axis has
    # 2 steps and the online-softmax accumulation path is exercised.
    B, N, CIN, E, H, FF, L = 2, 256, 3, 128, 4, 256, 4

    key = jax.random.PRNGKey(0)
    kq, kp, kr, kv_, kw = jax.random.split(key, 5)
    query = jax.random.normal(kq, (N, B, E), jnp.float32)                 # (num_query, B, E)
    query_pos = jax.random.uniform(kp, (B, N, CIN), jnp.float32)          # (B, num_query, Cin)
    reference_points = jax.random.uniform(kr, (B, N, 2), jnp.float32)     # (B, num_query, 2)
    valid_ratios = jax.random.uniform(kv_, (B, L, 2), jnp.float32,
                                      minval=0.5, maxval=1.0)             # (B, levels, 2)

    params = init_params(kw, CIN, E, FF)
    module = TransformerDecoderLayerWithPos(params, num_heads=H,
                                            tile_n=128, tile_q=128, tile_kv=128)

    output, ref_input = module.forward(query, query_pos, reference_points, valid_ratios)
    jax.block_until_ready((output, ref_input))

    assert output.shape == (N, B, E)
    assert ref_input.shape == (B, N, L, 2)

    # correctness vs pure-JAX f32 reference (kernel uses bf16 matmul operands -> loose tol)
    out_ref = _reference_forward(query, query_pos, params, H)
    err = float(jnp.max(jnp.abs(output - out_ref)))
    assert err < 1e-1, f"max abs error vs reference: {err}"

    print("KERNEL_OK")
</pallas_src>

<mosaic_0001>
module attributes {stable_mosaic.version = 11 : i64} {
  func.func @_kv_proj_kernel(%arg0: i32, %arg1: i32, %arg2: memref<1x128x128xf32, #tpu.memory_space<vmem>>, %arg3: memref<1x128x3xf32, #tpu.memory_space<vmem>>, %arg4: memref<3x128xf32, #tpu.memory_space<vmem>>, %arg5: memref<1x128xf32, #tpu.memory_space<vmem>>, %arg6: memref<1x128xf32, #tpu.memory_space<vmem>>, %arg7: memref<1x128xf32, #tpu.memory_space<vmem>>, %arg8: memref<128x128xbf16, #tpu.memory_space<vmem>>, %arg9: memref<1x128xf32, #tpu.memory_space<vmem>>, %arg10: memref<128x128xbf16, #tpu.memory_space<vmem>>, %arg11: memref<1x128xf32, #tpu.memory_space<vmem>>, %arg12: memref<128x128xbf16, #tpu.memory_space<vmem>>, %arg13: memref<1x128xf32, #tpu.memory_space<vmem>>, %arg14: memref<1x128x256xbf16, #tpu.memory_space<vmem>>) attributes {dimension_semantics = [#tpu.dimension_semantics<parallel>, #tpu.dimension_semantics<parallel>], iteration_bounds = array<i64: 2, 2>, scalar_prefetch = 0 : i64, scratch_operands = 0 : i64, tpu.core_type = #tpu.core_type<tc>, window_params = [{transform_indices = @transform_0, window_bounds = array<i64: 1, 128, 128>}, {transform_indices = @transform_1, window_bounds = array<i64: 1, 128, 3>}, {pipeline_mode = #tpu.pipeline_mode<synchronous>, transform_indices = @transform_2, window_bounds = array<i64: 3, 128>}, {pipeline_mode = #tpu.pipeline_mode<synchronous>, transform_indices = @transform_3, window_bounds = array<i64: 1, 128>}, {pipeline_mode = #tpu.pipeline_mode<synchronous>, transform_indices = @transform_4, window_bounds = array<i64: 1, 128>}, {pipeline_mode = #tpu.pipeline_mode<synchronous>, transform_indices = @transform_5, window_bounds = array<i64: 1, 128>}, {pipeline_mode = #tpu.pipeline_mode<synchronous>, transform_indices = @transform_6, window_bounds = array<i64: 128, 128>}, {pipeline_mode = #tpu.pipeline_mode<synchronous>, transform_indices = @transform_7, window_bounds = array<i64: 1, 128>}, {pipeline_mode = #tpu.pipeline_mode<synchronous>, transform_indices = @transform_8, window_bounds = array<i64: 128, 128>}, {pipeline_mode = #tpu.pipeline_mode<synchronous>, transform_indices = @transform_9, window_bounds = array<i64: 1, 128>}, {pipeline_mode = #tpu.pipeline_mode<synchronous>, transform_indices = @transform_10, window_bounds = array<i64: 128, 128>}, {pipeline_mode = #tpu.pipeline_mode<synchronous>, transform_indices = @transform_11, window_bounds = array<i64: 1, 128>}, {transform_indices = @transform_12, window_bounds = array<i64: 1, 128, 256>}]} {
    %c0 = arith.constant 0 : index
    %c0_0 = arith.constant 0 : index
    %c0_1 = arith.constant 0 : index
    %0 = vector.load %arg2[%c0, %c0_0, %c0_1] : memref<1x128x128xf32, #tpu.memory_space<vmem>>, vector<1x128x128xf32>
    %1 = vector.shape_cast %0 : vector<1x128x128xf32> to vector<128x128xf32>
    %c0_2 = arith.constant 0 : index
    %c0_3 = arith.constant 0 : index
    %c0_4 = arith.constant 0 : index
    %2 = vector.load %arg3[%c0_2, %c0_3, %c0_4] : memref<1x128x3xf32, #tpu.memory_space<vmem>>, vector<1x128x3xf32>
    %3 = vector.shape_cast %2 : vector<1x128x3xf32> to vector<128x3xf32>
    %c0_5 = arith.constant 0 : index
    %c0_6 = arith.constant 0 : index
    %4 = vector.load %arg4[%c0_5, %c0_6] : memref<3x128xf32, #tpu.memory_space<vmem>>, vector<3x128xf32>
    %cst = arith.constant 0.000000e+00 : f32
    %5 = vector.broadcast %cst : f32 to vector<128x128xf32>
    %c0_7 = arith.constant 0 : index
    %c0_8 = arith.constant 0 : index
    %6 = vector.load %arg5[%c0_7, %c0_8] : memref<1x128xf32, #tpu.memory_space<vmem>>, vector<1x128xf32>
    %7 = vector.broadcast %6 : vector<1x128xf32> to vector<128x128xf32>
    %8 = arith.addf %5, %7 : vector<128x128xf32>
    %9 = vector.extract_strided_slice %3 {offsets = [0, 0], sizes = [128, 1], strides = [1, 1]} : vector<128x3xf32> to vector<128x1xf32>
    %10 = vector.extract_strided_slice %4 {offsets = [0, 0], sizes = [1, 128], strides = [1, 1]} : vector<3x128xf32> to vector<1x128xf32>
    %11 = vector.broadcast %9 : vector<128x1xf32> to vector<128x128xf32>
    %12 = vector.broadcast %10 : vector<1x128xf32> to vector<128x128xf32>
    %13 = arith.mulf %11, %12 : vector<128x128xf32>
    %14 = arith.addf %8, %13 : vector<128x128xf32>
    %15 = vector.extract_strided_slice %3 {offsets = [0, 1], sizes = [128, 1], strides = [1, 1]} : vector<128x3xf32> to vector<128x1xf32>
    %16 = vector.extract_strided_slice %4 {offsets = [1, 0], sizes = [1, 128], strides = [1, 1]} : vector<3x128xf32> to vector<1x128xf32>
    %17 = vector.broadcast %15 : vector<128x1xf32> to vector<128x128xf32>
    %18 = vector.broadcast %16 : vector<1x128xf32> to vector<128x128xf32>
    %19 = arith.mulf %17, %18 : vector<128x128xf32>
    %20 = arith.addf %14, %19 : vector<128x128xf32>
    %21 = vector.extract_strided_slice %3 {offsets = [0, 2], sizes = [128, 1], strides = [1, 1]} : vector<128x3xf32> to vector<128x1xf32>
    %22 = vector.extract_strided_slice %4 {offsets = [2, 0], sizes = [1, 128], strides = [1, 1]} : vector<3x128xf32> to vector<1x128xf32>
    %23 = vector.broadcast %21 : vector<128x1xf32> to vector<128x128xf32>
    %24 = vector.broadcast %22 : vector<1x128xf32> to vector<128x128xf32>
    %25 = arith.mulf %23, %24 : vector<128x128xf32>
    %26 = arith.addf %20, %25 : vector<128x128xf32>
    %c0_9 = arith.constant 0 : index
    %c0_10 = arith.constant 0 : index
    %27 = vector.load %arg6[%c0_9, %c0_10] : memref<1x128xf32, #tpu.memory_space<vmem>>, vector<1x128xf32>
    %28 = vector.broadcast %27 : vector<1x128xf32> to vector<128x128xf32>
    %29 = arith.mulf %26, %28 : vector<128x128xf32>
    %c0_11 = arith.constant 0 : index
    %c0_12 = arith.constant 0 : index
    %30 = vector.load %arg7[%c0_11, %c0_12] : memref<1x128xf32, #tpu.memory_space<vmem>>, vector<1x128xf32>
    %31 = vector.broadcast %30 : vector<1x128xf32> to vector<128x128xf32>
    %32 = arith.addf %29, %31 : vector<128x128xf32>
    %cst_13 = arith.constant 0.000000e+00 : f32
    %33 = vector.broadcast %cst_13 : f32 to vector<128x128xf32>
    %34 = arith.maximumf %32, %33 : vector<128x128xf32>
    %35 = arith.truncf %34 : vector<128x128xf32> to vector<128x128xbf16>
    %c0_14 = arith.constant 0 : index
    %c0_15 = arith.constant 0 : index
    %36 = vector.load %arg8[%c0_14, %c0_15] : memref<128x128xbf16, #tpu.memory_space<vmem>>, vector<128x128xbf16>
    %cst_16 = arith.constant dense<0.000000e+00> : vector<128x128xf32>
    %37 = tpu.matmul %35, %36, %cst_16 {dimension_numbers = #tpu.dot_dimension_numbers<[1], [0], [0], [1], [0, 0, 1, 1], [], []>} : vector<128x128xbf16>, vector<128x128xbf16>, vector<128x128xf32> -> vector<128x128xf32>
    %c0_17 = arith.constant 0 : index
    %c0_18 = arith.constant 0 : index
    %38 = vector.load %arg9[%c0_17, %c0_18] : memref<1x128xf32, #tpu.memory_space<vmem>>, vector<1x128xf32>
    %39 = vector.broadcast %38 : vector<1x128xf32> to vector<128x128xf32>
    %40 = arith.addf %37, %39 : vector<128x128xf32>
    %41 = arith.addf %1, %40 : vector<128x128xf32>
    %42 = arith.truncf %41 : vector<128x128xf32> to vector<128x128xbf16>
    %c0_19 = arith.constant 0 : index
    %c0_20 = arith.constant 0 : index
    %43 = vector.load %arg10[%c0_19, %c0_20] : memref<128x128xbf16, #tpu.memory_space<vmem>>, vector<128x128xbf16>
    %cst_21 = arith.constant dense<0.000000e+00> : vector<128x128xf32>
    %44 = tpu.matmul %42, %43, %cst_21 {dimension_numbers = #tpu.dot_dimension_numbers<[1], [0], [0], [1], [0, 0, 1, 1], [], []>} : vector<128x128xbf16>, vector<128x128xbf16>, vector<128x128xf32> -> vector<128x128xf32>
    %c0_22 = arith.constant 0 : index
    %c0_23 = arith.constant 0 : index
    %45 = vector.load %arg11[%c0_22, %c0_23] : memref<1x128xf32, #tpu.memory_space<vmem>>, vector<1x128xf32>
    %46 = vector.broadcast %45 : vector<1x128xf32> to vector<128x128xf32>
    %47 = arith.addf %44, %46 : vector<128x128xf32>
    %48 = arith.truncf %1 : vector<128x128xf32> to vector<128x128xbf16>
    %c0_24 = arith.constant 0 : index
    %c0_25 = arith.constant 0 : index
    %49 = vector.load %arg12[%c0_24, %c0_25] : memref<128x128xbf16, #tpu.memory_space<vmem>>, vector<128x128xbf16>
    %cst_26 = arith.constant dense<0.000000e+00> : vector<128x128xf32>
    %50 = tpu.matmul %48, %49, %cst_26 {dimension_numbers = #tpu.dot_dimension_numbers<[1], [0], [0], [1], [0, 0, 1, 1], [], []>} : vector<128x128xbf16>, vector<128x128xbf16>, vector<128x128xf32> -> vector<128x128xf32>
    %c0_27 = arith.constant 0 : index
    %c0_28 = arith.constant 0 : index
    %51 = vector.load %arg13[%c0_27, %c0_28] : memref<1x128xf32, #tpu.memory_space<vmem>>, vector<1x128xf32>
    %52 = vector.broadcast %51 : vector<1x128xf32> to vector<128x128xf32>
    %53 = arith.addf %50, %52 : vector<128x128xf32>
    %54 = arith.truncf %47 : vector<128x128xf32> to vector<128x128xbf16>
    %55 = arith.truncf %53 : vector<128x128xf32> to vector<128x128xbf16>
    %56 = tpu.concatenate %54, %55 in 1 : vector<128x128xbf16>, vector<128x128xbf16> -> vector<128x256xbf16>
    %c0_29 = arith.constant 0 : index
    %c0_30 = arith.constant 0 : index
    %c0_31 = arith.constant 0 : index
    %57 = vector.load %arg14[%c0_29, %c0_30, %c0_31] : memref<1x128x256xbf16, #tpu.memory_space<vmem>>, vector<1x128x256xbf16>
    %58 = vector.shape_cast %57 : vector<1x128x256xbf16> to vector<128x256xbf16>
    %59 = vector.shape_cast %56 : vector<128x256xbf16> to vector<1x128x256xbf16>
    tpu.vector_store %arg14[%c0_29, %c0_30, %c0_31], %59 {strides = array<i32>} : memref<1x128x256xbf16, #tpu.memory_space<vmem>>, vector<1x128x256xbf16>,
    return
  }
  func.func @transform_0(%arg0: i32, %arg1: i32) -> (i32, i32, i32) {
    %c0_i32 = arith.constant 0 : i32
    %c0_i32_0 = arith.constant 0 : i32
    return %arg0, %arg1, %c0_i32 : i32, i32, i32
  }
  func.func @transform_1(%arg0: i32, %arg1: i32) -> (i32, i32, i32) {
    %c0_i32 = arith.constant 0 : i32
    %c0_i32_0 = arith.constant 0 : i32
    return %arg0, %arg1, %c0_i32 : i32, i32, i32
  }
  func.func @transform_2(%arg0: i32, %arg1: i32) -> (i32, i32) {
    %c0_i32 = arith.constant 0 : i32
    %c0_i32_0 = arith.constant 0 : i32
    %c0_i32_1 = arith.constant 0 : i32
    return %c0_i32, %c0_i32_0 : i32, i32
  }
  func.func @transform_3(%arg0: i32, %arg1: i32) -> (i32, i32) {
    %c0_i32 = arith.constant 0 : i32
    %c0_i32_0 = arith.constant 0 : i32
    %c0_i32_1 = arith.constant 0 : i32
    return %c0_i32, %c0_i32_0 : i32, i32
  }
  func.func @transform_4(%arg0: i32, %arg1: i32) -> (i32, i32) {
    %c0_i32 = arith.constant 0 : i32
    %c0_i32_0 = arith.constant 0 : i32
    %c0_i32_1 = arith.constant 0 : i32
    return %c0_i32, %c0_i32_0 : i32, i32
  }
  func.func @transform_5(%arg0: i32, %arg1: i32) -> (i32, i32) {
    %c0_i32 = arith.constant 0 : i32
    %c0_i32_0 = arith.constant 0 : i32
    %c0_i32_1 = arith.constant 0 : i32
    return %c0_i32, %c0_i32_0 : i32, i32
  }
  func.func @transform_6(%arg0: i32, %arg1: i32) -> (i32, i32) {
    %c0_i32 = arith.constant 0 : i32
    %c0_i32_0 = arith.constant 0 : i32
    %c0_i32_1 = arith.constant 0 : i32
    return %c0_i32, %c0_i32_0 : i32, i32
  }
  func.func @transform_7(%arg0: i32, %arg1: i32) -> (i32, i32) {
    %c0_i32 = arith.constant 0 : i32
    %c0_i32_0 = arith.constant 0 : i32
    %c0_i32_1 = arith.constant 0 : i32
    return %c0_i32, %c0_i32_0 : i32, i32
  }
  func.func @transform_8(%arg0: i32, %arg1: i32) -> (i32, i32) {
    %c0_i32 = arith.constant 0 : i32
    %c0_i32_0 = arith.constant 0 : i32
    %c0_i32_1 = arith.constant 0 : i32
    return %c0_i32, %c0_i32_0 : i32, i32
  }
  func.func @transform_9(%arg0: i32, %arg1: i32) -> (i32, i32) {
    %c0_i32 = arith.constant 0 : i32
    %c0_i32_0 = arith.constant 0 : i32
    %c0_i32_1 = arith.constant 0 : i32
    return %c0_i32, %c0_i32_0 : i32, i32
  }
  func.func @transform_10(%arg0: i32, %arg1: i32) -> (i32, i32) {
    %c0_i32 = arith.constant 0 : i32
    %c0_i32_0 = arith.constant 0 : i32
    %c0_i32_1 = arith.constant 0 : i32
    return %c0_i32, %c0_i32_0 : i32, i32
  }
  func.func @transform_11(%arg0: i32, %arg1: i32) -> (i32, i32) {
    %c0_i32 = arith.constant 0 : i32
    %c0_i32_0 = arith.constant 0 : i32
    %c0_i32_1 = arith.constant 0 : i32
    return %c0_i32, %c0_i32_0 : i32, i32
  }
  func.func @transform_12(%arg0: i32, %arg1: i32) -> (i32, i32, i32) {
    %c0_i32 = arith.constant 0 : i32
    %c0_i32_0 = arith.constant 0 : i32
    return %arg0, %arg1, %c0_i32 : i32, i32, i32
  }
}

</mosaic_0001>

<bundles_post_ra>
// kernel: tpu_custom_call.1
= control target key start
LH: loop header
LB: loop body
LE: loop exit
PB: predicated region body
PF: predicated region fallthrough
CT: control target
= control target key end

     0   :  { %s2707_s0 = inlined_call_operand.vmem [shape: f32[2,256,128], index: 0, kind: input, shape index: {}]   ;;  %s2708_s1 = inlined_call_operand.vmem [shape: f32[2,256,3], index: 1, kind: input, shape index: {}]   ;;  %s2709_s2 = inlined_call_operand.vmem [shape: f32[3,128], index: 2, kind: input, shape index: {}]   ;;  %s2710_s3 = inlined_call_operand.vmem [shape: f32[1,128], index: 3, kind: input, shape index: {}]   ;;  %s2711_s4 = inlined_call_operand.vmem [shape: f32[1,128], index: 4, kind: input, shape index: {}]   ;;  %s2712_s5 = inlined_call_operand.vmem [shape: f32[1,128], index: 5, kind: input, shape index: {}]   ;;  %s2713_s6 = inlined_call_operand.hbm [shape: bf16[128,128], index: 6, kind: input, shape index: {}]   ;;  %s2714_s7 = inlined_call_operand.vmem [shape: f32[1,128], index: 7, kind: input, shape index: {}]   ;;  %s2715_s8 = inlined_call_operand.hbm [shape: bf16[128,128], index: 8, kind: input, shape index: {}]   ;;  %s2716_s9 = inlined_call_operand.vmem [shape: f32[1,128], index: 9, kind: input, shape index: {}]   ;;  %s2717_s10 = inlined_call_operand.hbm [shape: bf16[128,128], index: 10, kind: input, shape index: {}]   ;;  %s2718_s11 = inlined_call_operand.vmem [shape: f32[1,128], index: 11, kind: input, shape index: {}]   ;;  %s2719_s12 = inlined_call_operand.hbm [shape: bf16[2,256,256], index: 12, kind: output, shape index: {}]  }
   0x1   :  { %2732 = sst [smem:[#allocation22_spill]] %s2715_s8 }
   0x2   :  { %2733 = sst [smem:[#allocation23_spill]] %s2719_s12 }
   0x3   :  { %17 = vsyncpa [#allocation3], 0 }
   0x4   :  { %18 = vsyncpa [#allocation6], 0 }
   0x5   :  { %19 = vsyncpa [#allocation4], 0 }
   0x6   :  { %21 = vsyncpa [#allocation4 + $0x1], 0  ;;  %s2206_s21 = smov 0   ;;  %s2208_s22 = smov 0  }
   0x7   :  { %s2210_s23 = smov 0   ;;  %s2212_s24 = smov 0  }
   0x8   :  { %s2214_s25 = smov 0   ;;  %s2216_s26 = smov 0  }
   0x9   :  { %s2218_s27 = smov 0   ;;  %s2220_s28 = smov 0  }
   0xa LB: > { %2734 = sst [smem:[#allocation12_spill]] %s2101_s21  ;;  %s1615_s29 = sadd.s32 4294967295, %s2129_s28   ;;  %s2129_s28 = sphi %s2220_s28, %s27_s28   ;;  %s2125_s27 = sphi %s2218_s27, %s2764_s27   ;;  %s2121_s26 = sphi %s2216_s26, %s2760_s26   ;;  %s2117_s25 = sphi %s2214_s25, %s2759_s25   ;;  %s2113_s24 = sphi %s2212_s24, %s2758_s24   ;;  %s2109_s23 = sphi %s2210_s23, %s2757_s23   ;;  %s2105_s22 = sphi %s2208_s22, %s2763_s22   ;;  %s2101_s21 = sphi %s2206_s21, %s2762_s21  }
   0xb   : > { %2735 = sst [smem:[#allocation13_spill]] %s2109_s23  ;;  %s1616_s30 = sadd.s32 4294967294, %s2129_s28  }
   0xc   : > { %2736 = sst [smem:[#allocation14_spill]] %s2121_s26  ;;  %s36_s13 = sadd.s32 1, %s2121_s26 }
   0xd   : > { %2737 = sst [smem:[#allocation15_spill]] %s2125_s27  ;;  %s39_s14 = sadd.s32 1, %s2125_s27 }
   0xe   : > { %2738 = sst [smem:[#allocation16_spill]] %s2129_s28  ;;  %p37_p0 = scmp.ge.s32.totalorder %s36_s13, 2 }
   0xf   : > { %s314_s15 = sadd.s32 1, %s2109_s23  ;;  %p324_p1 = scmp.ne.s32.totalorder %s2109_s23, %s2105_s22 }
  0x10   : > { %p325_p2 = scmp.eq.s32.totalorder %s1615_s29, 3  ;;  %s2766_s13 = smov (%p37_p0, %s36_s13), 0 }
  0x11   : > { %2739 = sst [smem:[#allocation17_spill]] %s2766_s13  ;;  %s2768_s14 = smov (!%p37_p0, %s39_s14), %s2125_s27 }
  0x12   : > { %s310_s16 = ssub.s32 %s2121_s26, %s2766_s13  ;;  %p2258_p3 = por %p325_p2, %p324_p1 }
  0x13   : > { %p41_p4 = scmp.ge.s32.totalorder %s2768_s14, 2  ;;  %p330_p5 = scmp.ne.s32.totalorder %s2105_s22, %s2101_s21 }
  0x14   : > { %s2740_s17 = scalar_select %p2258_p3, 1, 0 }
  0x15   : > { %p331_p6 = scmp.eq.s32.totalorder %s1616_s30, 3  ;;  %p1617_p7 = scmp.ge.s32.totalorder %s2129_s28, 1 }
  0x16   : > { %2741 = sst [smem:[#allocation18_spill]] %s2740_s17  ;;  %s2770_s14 = smov (%p41_p4, %s2768_s14), 0 }
  0x17   : > { %2742 = sst [smem:[#allocation19_spill]] %s2770_s14  ;;  %p2267_p8 = por %p331_p6, %p330_p5 }
  0x18   : > { %p338_p9 = scmp.lt.s32.totalorder %s2129_s28, 5  ;;  %s309_s19 = ssub.s32 %s2125_s27, %s2770_s14 }
  0x19   : > { %s2743_s18 = scalar_select %p2267_p8, 1, 0 }
  0x1a   : > { %s311_s20 = sor.u32 %s310_s16, %s309_s19  ;;  %p2274_p10 = pnand %p1617_p7, %p338_p9 }
  0x1b   : > { %2744 = sst [smem:[#allocation20_spill]] %s2743_s18  ;;  %p312_p11 = scmp.eq.s32.totalorder %s311_s20, 0 }
  0x1c   : > { %p2278_p12 = scmp.eq.s32.totalorder %s1615_s29, 0  ;;  %p1799_p13 = pneg %p2274_p10 }
  0x1d   : > { %s2285_s30 = scalar_select %p312_p11, %s2109_s23, %s314_s15  }
  0x1e   : > { %p2289_p0 = pnand %p2278_p12, %p1799_p13  ;;  %s2749_s8 = sld [smem:[#allocation22_spill]] }
  0x1f   : > { %2747 = sst [smem:[#allocation21_spill]] %s2285_s30  ;;  %s2131_s29 = smov [#allocation5]  }
  0x20   : > { %s380_s14 = sshll.u32 %s2131_s29, 4  ;;  %s2132_s27 = smov 64   ;;  %s381_s14 = int_to_ptr.vmem [resolvable:$true] %s380_s14 }
  0x21   : > { %s2133_s21 = smov 4   ;;  %s361_s23 = sshll.u32 %s2713_s6, 4  ;;  %s362_s23 = int_to_ptr.hbm [resolvable:$true] %s361_s23 }
  0x22   : > { %s2134_s28 = smov [#allocation2]   ;;  %s2135_s29 = smov [#allocation7]  }
  0x23   : > { %s363_s17 = sshll.u32 %s2134_s28, 4  ;;  %s397_s12 = sshll.u32 %s2135_s29, 4  ;;  %s364_s17 = int_to_ptr.vmem [resolvable:$true] %s363_s17  ;;  %s398_s12 = int_to_ptr.vmem [resolvable:$true] %s397_s12 }
  0x24   : > { %s378_s20 = sshll.u32 %s2749_s8, 4  ;;  %s395_s8 = sshll.u32 %s2717_s10, 4  ;;  %s379_s20 = int_to_ptr.hbm [resolvable:$true] %s378_s20  ;;  %s396_s8 = int_to_ptr.hbm [resolvable:$true] %s395_s8 }
  0x25   : > { %1805 = dma.hbm_to_vmem [thread:$0]  (!%p2289_p0), %s379_s20, 1024, %s381_s14, [#allocation6], %s2132_s27, %s2132_s27, %s2133_s21  }
  0x26   : > { %1802 = dma.hbm_to_vmem [thread:$0]  (!%p2289_p0), %s362_s23, 1024, %s364_s17, [#allocation3], %s2132_s27, %s2132_s27, %s2133_s21  }
  0x27   : > { %1808 = dma.hbm_to_vmem [thread:$0]  (!%p2289_p0), %s396_s8, 1024, %s398_s12, [#allocation6], %s2132_s27, %s2132_s27, %s2133_s21  }
  0x28   : > { %442 = sbr.rel (%p2274_p10) target bundleno = 621 (0x26d), region = 68 }
  0x2d   : > { %2088 = dma.done.wait (%p2278_p12), [#allocation3], 1024  }
  0x2e   : > { %2090 = vsyncadd (%p2278_p12), [#allocation3], 4294966272 }
  0x2f   : > { %2092 = dma.done.wait (%p2278_p12), [#allocation6], 2048  }
  0x30   : > { %2094 = vsyncadd (%p2278_p12), [#allocation6], 4294965248  ;;  %s1627_s23 = sshll.u32 %s2113_s24, 4  ;;  %p509_p1 = scmp.lt.s32.totalorder %s2117_s25, 1  ;;  %v2136_v0 = vmov 2   ;;  %v2137_v1 = vmov 1  }
  0x31   : > { %1902 = vset.pattern.permute.xlu0 %v2136_v0  ;;  %1895 = vset.pattern.permute.xlu2 %v2136_v0  ;;  %p511_p2 = scmp.lt.s32.totalorder %s1627_s23, 31  ;;  %v2138_v5 = vmov 0   ;;  %v1743_v16 = vld [vmem:[#allocation2 + $0x38] sm:$0xff]  ;;  %v1742_v17 = vld [vmem:[#allocation2 + $0x30] sm:$0xff]  ;;  %v1741_v19 = vld [vmem:[#allocation2 + $0x28] sm:$0xff]  ;;  %s505_s14 = sand.u32 1, %s2105_s22  }
  0x32   : > { %1894 = vset.pattern.permute.xlu1 %v2137_v1  ;;  %s510_s8 = scalar_select %p509_p1, %s2117_s25, 1  ;;  %1006 = vmatpush.bf16.msra.mxu0 %v1743_v16  ;;  %v1740_v20 = vld [vmem:[#allocation2 + $0x20] sm:$0xff]  ;;  %v1739_v21 = vld [vmem:[#allocation2 + $0x18] sm:$0xff]  ;;  %v1738_v23 = vld [vmem:[#allocation2 + $0x10] sm:$0xff] }
  0x33   : > { %s2772_s23 = smov (!%p511_p2, %s1627_s23), 31  ;;  %1761 = vmatpush.bf16.msra.mxu3 %v1743_v16  ;;  %v1737_v25 = vld [vmem:[#allocation2 + $0x8] sm:$0xff]  ;;  %v1736_v27 = vld [vmem:[#allocation2] sm:$0xff]  ;;  %s1626_s17 = sshll.u32 %s505_s14, 7 }
  0x34   : > { %s1628_s12 = sshll.u32 %s510_s8, 5  ;;  %v561_v31 = vld [vmem:[%s2709_s2] sm:$0x7]  ;;  %s2614_s18 = scalar_lea.vmem [#allocation8], %s1626_s17 }
  0x35   : > { %s2324_s21 = sadd.s32 %s1628_s12, %s2772_s23  ;;  %v2385_v32 = vperm.slane %v561_v31, 0  ;;  %v2387_v34 = vperm.slane %v561_v31, 1  ;;  %v2392_v35 = vld [vmem:[%s2710_s3] ss:$0 sm:$0xff]  ;;  %v2397_v39 = vperm.slane %v561_v31, 2  ;;  %s1760_s30 = sshll.u32 %s2113_s24, 5 }
  0x36   : > { %s1629_s26 = sshll.u32 %s2324_s21, 3  ;;  %1007 = vmatpush.bf16.msra.mxu0 %v1742_v17  ;;  %v2407_v49 = vld [vmem:[%s2711_s4] ss:$0 sm:$0xff]  ;;  %s1732_s20 = sshll.u32 %s2117_s25, 6 }
  0x37   : > { %s2332_s13 = scalar_lea.vmem %s2708_s1, %s1629_s26  ;;  %1762 = vmatpush.bf16.msra.mxu3 %v1742_v17  ;;  %v2418_v56 = vld [vmem:[%s2712_s5] ss:$0 sm:$0xff]  ;;  %s2527_s8 = scalar_lea.vmem %s2707_s0, %s1629_s26 }
  0x38   : > { %v558_v2 = vld [vmem:[%s2332_s13 + $0x68] sm:$0xff]  ;;  %v545_v3 = vld [vmem:[%s2332_s13] sm:$0xff]  ;;  %v547_v6 = vld [vmem:[%s2332_s13 + $0x10] sm:$0xff]  ;;  %s1478_s15 = sadd.s32 %s1760_s30, %s1732_s20  ;;  %s2750_s24 = sld [smem:[#allocation23_spill]] }
  0x39   : > { %830 = vperm.xlu0 %1902, %v558_v2   ;;  %778 = vperm.xlu2 %1895, %v545_v3   ;;  %v546_v4 = vld [vmem:[%s2332_s13 + $0x8] sm:$0xff]  ;;  %v548_v7 = vld [vmem:[%s2332_s13 + $0x18] sm:$0xff]  ;;  %v557_v8 = vld [vmem:[%s2332_s13 + $0x60] sm:$0xff]  ;;  %s1733_s16 = sshll.u32 %s1478_s15, 2  ;;  %s1481_s12 = sshll.u32 %s2614_s18, 4  ;;  %s1482_s12 = int_to_ptr.vmem [resolvable:$true] %s1481_s12 }
  0x3a   : > { %681 = vperm.xlu1 %1894, %v545_v3   ;;  %v559_v9 = vld [vmem:[%s2332_s13 + $0x70] sm:$0xff]  ;;  %v550_v10 = vld [vmem:[%s2332_s13 + $0x28] sm:$0xff]  ;;  %v549_v11 = vld [vmem:[%s2332_s13 + $0x20] sm:$0xff]  ;;  %1008 = vmatpush.bf16.msra.mxu0 %v1741_v19  ;;  %s1466_s26 = scalar_lea.sflag [#allocation4], %s505_s14 }
  0x3b   : > { %v560_v12 = vld [vmem:[%s2332_s13 + $0x78] sm:$0xff]  ;;  %v551_v13 = vld [vmem:[%s2332_s13 + $0x30] sm:$0xff]  ;;  %v553_v15 = vld [vmem:[%s2332_s13 + $0x40] sm:$0xff]  ;;  %1763 = vmatpush.bf16.msra.mxu3 %v1741_v19 }
  0x3c   : > { %v552_v14 = vld [vmem:[%s2332_s13 + $0x38] sm:$0xff]  ;;  %v554_v28 = vld [vmem:[%s2332_s13 + $0x48] sm:$0xff]  ;;  %v555_v50 = vld [vmem:[%s2332_s13 + $0x50] sm:$0xff] }
  0x3d   : > { %v2371_v24 = vld [vmem:[%s2332_s13 + $0x58] sm:$0xff] }
  0x3e   : > { %1009 = vmatpush.bf16.msra.mxu0 %v1740_v20  ;;  %s1480_s25 = scalar_lea.hbm %s2750_s24, %s1733_s16 }
  0x3f   : > { %1764 = vmatpush.bf16.msra.mxu3 %v1740_v20  ;;  %s1483_s21 = sshll.u32 %s1480_s25, 4  ;;  %s1484_s21 = int_to_ptr.hbm [resolvable:$true] %s1483_s21 }
  0x40   : > { %s2041_s27 = sshra.s32 %s1484_s21, 4  ;;  %s2042_s27 = int_to_ptr.hbm [resolvable:$true] %s2041_s27 }
  0x41   : > { %1903 = vset.pattern.permute.xlu0 %v2138_v5  ;;  %782 = vperm.xlu2 %1895, %v546_v4   ;;  %s2043_s28 = scalar_lea.hbm %s2042_s27, 128 }
  0x42   : > { %685 = vperm.xlu1 %1894, %v546_v4   ;;  %569 = vperm.xlu0 %1903, %v545_v3   ;;  %p2044_p4 = scmp.ne.s32.totalorder %s2042_s27, %s2043_s28 }
  0x43   : > { %1010 = vmatpush.bf16.msra.mxu0 %v1739_v21  ;;  %1765 = vmatpush.bf16.msra.mxu3 %v1739_v21 }
  0x44   : > { %p2045_p5 = pnand %p2044_p4, %p2258_p3 }
  0x46   : > { %p2046_p6 = pneg %p2045_p5 }
  0x47   : > { %1011 = vmatpush.bf16.msra.mxu0 %v1738_v23  ;;  %1766 = vmatpush.bf16.msra.mxu3 %v1738_v23 }
  0x49   : > { %1897 = vset.pattern.permute.xlu2 %v2137_v1 }
  0x4a   : > { %1896 = vset.pattern.permute.xlu1 %v2138_v5  ;;  %574 = vperm.xlu0 %1903, %v546_v4  }
  0x4b   : > { %689 = vperm.xlu2 %1897, %v547_v6   ;;  %584 = vperm.xlu1 %1896, %v548_v7  }
  0x4c   : > { %1012 = vmatpush.bf16.msra.mxu0 %v1737_v25  ;;  %1767 = vmatpush.bf16.msra.mxu3 %v1737_v25 }
  0x50   : > { %1013 = vmatpush.bf16.msra.mxu0 %v1736_v27  ;;  %1768 = vmatpush.bf16.msra.mxu3 %v1736_v27 }
  0x52   : > { %579 = vperm.xlu0 %1903, %v547_v6  }
  0x53   : > { %1898 = vset.pattern.permute.xlu2 %v2138_v5  ;;  %629 = vperm.xlu1 %1896, %v557_v8  }
  0x54   : > { %634 = vperm.xlu2 %1898, %v558_v2  }
  0x5a   : > { %639 = vperm.xlu0 %1903, %v559_v9  }
  0x5b   : > { %1899 = vset.pattern.permute.xlu1 %v2136_v0 }
  0x5c   : > { %1900 = vset.pattern.permute.xlu2 %v2136_v0  ;;  %786 = vperm.xlu1 %1899, %v547_v6  }
  0x5d   : > { %790 = vperm.xlu2 %1900, %v548_v7  }
  0x62   : > { %1908 = vset.pattern.permute.xlu0 %v2137_v1 }
  0x63   : > { %693 = vperm.xlu0 %1908, %v548_v7  }
  0x64   : > { %1901 = vset.pattern.permute.xlu1 %v2137_v1 }
  0x65   : > { %826 = vperm.xlu2 %1900, %v557_v8   ;;  %733 = vperm.xlu1 %1901, %v558_v2  }
  0x6b   : > { %729 = vperm.xlu0 %1908, %v557_v8  }
  0x6d   : > { %1905 = vset.pattern.permute.xlu2 %v2138_v5  ;;  %1904 = vset.pattern.permute.xlu1 %v2138_v5 }
  0x6e   : > { %594 = vperm.xlu2 %1905, %v550_v10   ;;  %589 = vperm.xlu1 %1904, %v549_v11  }
  0x73   : > { %741 = vperm.xlu0 %1908, %v560_v12  }
  0x76   : > { %1907 = vset.pattern.permute.xlu2 %v2137_v1  ;;  %1906 = vset.pattern.permute.xlu1 %v2137_v1 }
  0x77   : > { %701 = vperm.xlu2 %1907, %v550_v10   ;;  %697 = vperm.xlu1 %1906, %v549_v11  }
  0x7b   : > { %705 = vperm.xlu0 %1908, %v551_v13  }
  0x7f   : > { %1910 = vset.pattern.permute.xlu2 %v2136_v0  ;;  %1909 = vset.pattern.permute.xlu1 %v2138_v5 }
  0x80   : > { %794 = vperm.xlu2 %1910, %v549_v11   ;;  %644 = vperm.xlu1 %1909, %v560_v12  }
  0x83   : > { %1918 = vset.pattern.permute.xlu0 %v2136_v0 }
  0x84   : > { %806 = vperm.xlu0 %1918, %v552_v14  }
  0x88   : > { %1912 = vset.pattern.permute.xlu2 %v2137_v1  ;;  %1911 = vset.pattern.permute.xlu1 %v2136_v0 }
  0x89   : > { %737 = vperm.xlu2 %1912, %v559_v9   ;;  %798 = vperm.xlu1 %1911, %v550_v10  }
  0x8c   : > { %810 = vperm.xlu0 %1918, %v553_v15  }
  0x91   : > { %834 = vperm.xlu1 %1911, %v559_v9   ;;  %1913 = vset.pattern.permute.xlu2 %v2136_v0 }
  0x92   : > { %838 = vperm.xlu2 %1913, %v560_v12  }
  0x93   : > { %v779_v18 = vpop.permute.xlu2 %778 }
  0x94   : > { %1925 = vset.pattern.permute.xlu0 %v2138_v5  ;;  %v842_v43 = vmul.f32 %v2397_v39, %v779_v18 }
  0x95   : > { %624 = vperm.xlu0 %1925, %v2371_v24  }
  0x99   : > { %1914 = vset.pattern.permute.xlu1 %v2138_v5 }
  0x9a   : > { %599 = vperm.xlu1 %1914, %v551_v13   ;;  %1915 = vset.pattern.permute.xlu2 %v2138_v5 }
  0x9b   : > { %604 = vperm.xlu2 %1915, %v552_v14   ;;  %v783_v22 = vpop.permute.xlu2 %782 }
  0x9c   : > { %v843_v53 = vmul.f32 %v2397_v39, %v783_v22 }
  0x9d   : > { %1930 = vset.pattern.permute.xlu0 %v2136_v0 }
  0xa2   : > { %1916 = vset.pattern.permute.xlu1 %v2137_v1 }
  0xa3   : > { %709 = vperm.xlu1 %1916, %v552_v14   ;;  %1917 = vset.pattern.permute.xlu2 %v2136_v0 }
  0xa4   : > { %802 = vperm.xlu2 %1917, %v551_v13  }
  0xa5   : > { %v2374_v26 = vpop.permute.xlu2 %689 }
  0xa6   : > { %v747_v9 = vmul.f32 %v2387_v34, %v2374_v26 }
  0xab   : > { %1919 = vset.pattern.permute.xlu1 %v2138_v5  ;;  %v2378_v29 = vpop.permute.xlu0 %830 }
  0xac   : > { %609 = vperm.xlu1 %1919, %v553_v15   ;;  %v682_v30 = vpop.permute.xlu1 %681  ;;  %1920 = vset.pattern.permute.xlu2 %v2138_v5  ;;  %v855_v23 = vmul.f32 %v2397_v39, %v2378_v29 }
  0xad   : > { %614 = vperm.xlu2 %1920, %v554_v28   ;;  %v745_v40 = vmul.f32 %v2387_v34, %v682_v30 }
  0xae   : > { %v635_v33 = vpop.permute.xlu2 %634 }
  0xaf   : > { %v661_v13 = vmul.f32 %v2385_v32, %v635_v33 }
  0xb1   : > { %v677_v18 = vadd.f32 %v2392_v35, %v661_v13 }
  0xb4   : > { %1921 = vset.pattern.permute.xlu1 %v2137_v1  ;;  %v686_v36 = vpop.permute.xlu1 %685  ;;  %v570_v37 = vpop.permute.xlu0 %569 }
  0xb5   : > { %v648_v38 = vmul.f32 %v2385_v32, %v570_v37  ;;  %713 = vperm.xlu1 %1921, %v553_v15   ;;  %1922 = vset.pattern.permute.xlu2 %v2137_v1  ;;  %v746_v51 = vmul.f32 %v2387_v34, %v686_v36 }
  0xb6   : > { %717 = vperm.xlu2 %1922, %v554_v28  }
  0xb7   : > { %v664_v41 = vadd.f32 %v2392_v35, %v648_v38  ;;  %v791_v44 = vpop.permute.xlu2 %790 }
  0xb8   : > { %v845_v20 = vmul.f32 %v2397_v39, %v791_v44 }
  0xb9   : > { %v761_v42 = vadd.f32 %v745_v40, %v664_v41 }
  0xbb   : > { %v858_v46 = vadd.f32 %v842_v43, %v761_v42 }
  0xbc   : > { %v575_v45 = vpop.permute.xlu0 %574 }
  0xbd   : > { %v649_v47 = vmul.f32 %v2385_v32, %v575_v45  ;;  %1923 = vset.pattern.permute.xlu1 %v2136_v0  ;;  %v585_v48 = vpop.permute.xlu1 %584  ;;  %v878_v55 = vmul.f32 %v2407_v49, %v858_v46 }
  0xbe   : > { %814 = vperm.xlu1 %1923, %v554_v28   ;;  %1924 = vset.pattern.permute.xlu2 %v2138_v5  ;;  %v651_v11 = vmul.f32 %v2385_v32, %v585_v48 }
  0xbf   : > { %v665_v52 = vadd.f32 %v2392_v35, %v649_v47  ;;  %619 = vperm.xlu2 %1924, %v555_v50   ;;  %v898_v61 = vadd.f32 %v2418_v56, %v878_v55  ;;  %v827_v62 = vpop.permute.xlu2 %826 }
  0xc0   : > { %v667_v16 = vadd.f32 %v2392_v35, %v651_v11  ;;  %v854_v40 = vmul.f32 %v2397_v39, %v827_v62 }
  0xc1   : > { %v762_v54 = vadd.f32 %v746_v51, %v665_v52  ;;  %v914_v2 = vmax.f32 %v898_v61, 0.0 }
  0xc3   : > { %v859_v57 = vadd.f32 %v843_v53, %v762_v54 }
  0xc4   : > { %v580_v58 = vpop.permute.xlu0 %579 }
  0xc5   : > { %v630_v59 = vpop.permute.xlu1 %629  ;;  %v879_v60 = vmul.f32 %v2407_v49, %v859_v57  ;;  %v650_v4 = vmul.f32 %v2385_v32, %v580_v58 }
  0xc6   : > { %1926 = vset.pattern.permute.xlu1 %v2137_v1 }
  0xc7   : > { %721 = vperm.xlu1 %1926, %v555_v50   ;;  %v899_v63 = vadd.f32 %v2418_v56, %v879_v60  ;;  %1927 = vset.pattern.permute.xlu2 %v2137_v1  ;;  %v666_v7 = vadd.f32 %v2392_v35, %v650_v4 }
  0xc8   : > { %725 = vperm.xlu2 %1927, %v2371_v24   ;;  %v595_v10 = vpop.permute.xlu2 %594 }
  0xc9   : > { %v915_v3 = vmax.f32 %v899_v63, 0.0  ;;  %v763_v12 = vadd.f32 %v747_v9, %v666_v7  ;;  %v653_v62 = vmul.f32 %v2385_v32, %v595_v10 }
  0xcb   : > { %v930_v5 = vpack.c.bf16 %v915_v3, %v914_v2  ;;  %v669_v7 = vadd.f32 %v2392_v35, %v653_v62 }
  0xcc   : > { %v2427_v6 = vpop.permute.xlu0 %639 }
  0xcd   : > { %1014 = vmatmul.bf16.vlgmr.msra.gmra.mxu0 %v930_v5 }
  0xce   : > { %v787_v8 = vpop.permute.xlu1 %786 }
  0xcf   : > { %1928 = vset.pattern.permute.xlu1 %v2136_v0  ;;  %v844_v1 = vmul.f32 %v2397_v39, %v787_v8 }
  0xd0   : > { %818 = vperm.xlu1 %1928, %v555_v50   ;;  %1929 = vset.pattern.permute.xlu2 %v2136_v0 }
  0xd1   : > { %822 = vperm.xlu2 %1929, %v2371_v24   ;;  %v860_v14 = vadd.f32 %v844_v1, %v763_v12  ;;  %v660_v24 = vmul.f32 %v2385_v32, %v630_v59  ;;  %v702_v25 = vpop.permute.xlu2 %701 }
  0xd2   : > { %v750_v8 = vmul.f32 %v2387_v34, %v702_v25 }
  0xd3   : > { %v880_v0 = vmul.f32 %v2407_v49, %v860_v14  ;;  %v676_v36 = vadd.f32 %v2392_v35, %v660_v24 }
  0xd4   : > { %v766_v12 = vadd.f32 %v750_v8, %v669_v7 }
  0xd5   : > { %v694_v15 = vpop.permute.xlu0 %693  ;;  %v900_v31 = vadd.f32 %v2418_v56, %v880_v0 }
  0xd6   : > { %v748_v17 = vmul.f32 %v2387_v34, %v694_v15 }
  0xd7   : > { %v734_v19 = vpop.permute.xlu1 %733  ;;  %v916_v42 = vmax.f32 %v900_v31, 0.0 }
  0xd8   : > { %v764_v21 = vadd.f32 %v748_v17, %v667_v16  ;;  %v758_v22 = vmul.f32 %v2387_v34, %v734_v19  ;;  %v662_v17 = vmul.f32 %v2385_v32, %v2427_v6 }
  0xda   : > { %v861_v26 = vadd.f32 %v845_v20, %v764_v21  ;;  %v774_v27 = vadd.f32 %v758_v22, %v677_v18  ;;  %v795_v47 = vpop.permute.xlu2 %794 }
  0xdb   : > { %v846_v63 = vmul.f32 %v2397_v39, %v795_v47 }
  0xdc   : > { %v871_v28 = vadd.f32 %v855_v23, %v774_v27  ;;  %v881_v30 = vmul.f32 %v2407_v49, %v861_v26  ;;  %v678_v23 = vadd.f32 %v2392_v35, %v662_v17 }
  0xdd   : > { %v730_v33 = vpop.permute.xlu0 %729 }
  0xde   : > { %v757_v37 = vmul.f32 %v2387_v34, %v730_v33  ;;  %v901_v38 = vadd.f32 %v2418_v56, %v881_v30  ;;  %v891_v44 = vmul.f32 %v2407_v49, %v871_v28 }
  0xe0   : > { %v773_v29 = vadd.f32 %v757_v37, %v676_v36  ;;  %v590_v41 = vpop.permute.xlu1 %589  ;;  %v917_v43 = vmax.f32 %v901_v38, 0.0  ;;  %v911_v50 = vadd.f32 %v2418_v56, %v891_v44 }
  0xe1   : > { %v652_v57 = vmul.f32 %v2385_v32, %v590_v41 }
  0xe2   : > { %v870_v45 = vadd.f32 %v854_v40, %v773_v29  ;;  %v931_v46 = vpack.c.bf16 %v917_v43, %v916_v42  ;;  %v927_v53 = vmax.f32 %v911_v50, 0.0 }
  0xe3   : > { %v738_v58 = vpop.permute.xlu2 %737  ;;  %v668_v60 = vadd.f32 %v2392_v35, %v652_v57 }
  0xe4   : > { %1019 = vmatmul.bf16.gmra.mxu0 %v931_v46  ;;  %v890_v48 = vmul.f32 %v2407_v49, %v870_v45  ;;  %v759_v20 = vmul.f32 %v2387_v34, %v738_v58  ;;  %v2490_v58 = vld [vmem:[#allocation7 + $0x30] sm:$0xff] }
  0xe5   : > { %v742_v4 = vpop.permute.xlu0 %741 }
  0xe6   : > { %v910_v51 = vadd.f32 %v2418_v56, %v890_v48  ;;  %v760_v11 = vmul.f32 %v2387_v34, %v742_v4  ;;  %v775_v25 = vadd.f32 %v759_v20, %v678_v23  ;;  %v2497_v4 = vld [vmem:[#allocation7 + $0x28] sm:$0xff] }
  0xe8   : > { %v926_v52 = vmax.f32 %v910_v51, 0.0 }
  0xe9   : > { %v698_v54 = vpop.permute.xlu1 %697 }
  0xea   : > { %v936_v55 = vpack.c.bf16 %v927_v53, %v926_v52  ;;  %v749_v59 = vmul.f32 %v2387_v34, %v698_v54  ;;  %v2487_v54 = vld [vmem:[#allocation7 + $0x38] sm:$0xff] }
  0xeb   : > { %1272 = vmatpush.bf16.msra.mxu2 %v2487_v54 }
  0xec   : > { %1044 = vmatmul.bf16.vlgmr.msra.gmra.mxu3 %v936_v55  ;;  %v765_v2 = vadd.f32 %v749_v59, %v668_v60  ;;  %v839_v5 = vpop.permute.xlu2 %838 }
  0xed   : > { %v857_v10 = vmul.f32 %v2397_v39, %v839_v5  ;;  %v706_v29 = vpop.permute.xlu0 %705 }
  0xee   : > { %v862_v9 = vadd.f32 %v846_v63, %v765_v2  ;;  %v751_v46 = vmul.f32 %v2387_v34, %v706_v29  ;;  %v1751_v2 = vld [vmem:[#allocation5 + $0x38] sm:$0xff] }
  0xef   : > { %1273 = vmatpush.bf16.msra.mxu2 %v2490_v58  ;;  %1147 = vmatpush.bf16.msra.mxu1 %v1751_v2 }
  0xf0   : > { %v882_v16 = vmul.f32 %v2407_v49, %v862_v9  ;;  %1769 = vmatpush.bf16.msrb.mxu3 %v1751_v2  ;;  %v1750_v9 = vld [vmem:[#allocation5 + $0x30] sm:$0xff] }
  0xf2   : > { %v645_v61 = vpop.permute.xlu1 %644  ;;  %v902_v22 = vadd.f32 %v2418_v56, %v882_v16  ;;  %v2506_v16 = vld [vmem:[#allocation7 + $0x18] sm:$0xff] }
  0xf3   : > { %v663_v3 = vmul.f32 %v2385_v32, %v645_v61  ;;  %1274 = vmatpush.bf16.msra.mxu2 %v2497_v4  ;;  %1148 = vmatpush.bf16.msra.mxu1 %v1750_v9 }
  0xf4   : > { %v918_v6 = vmax.f32 %v902_v22, 0.0  ;;  %1770 = vmatpush.bf16.msrb.mxu3 %v1750_v9 }
  0xf5   : > { %v679_v1 = vadd.f32 %v2392_v35, %v663_v3  ;;  %v605_v19 = vpop.permute.xlu2 %604 }
  0xf6   : > { %v655_v51 = vmul.f32 %v2385_v32, %v605_v19  ;;  %v807_v53 = vpop.permute.xlu0 %806  ;;  %v1748_v19 = vld [vmem:[#allocation5 + $0x20] sm:$0xff] }
  0xf7   : > { %v776_v14 = vadd.f32 %v760_v11, %v679_v1  ;;  %v849_v61 = vmul.f32 %v2397_v39, %v807_v53  ;;  %v2502_v1 = vld [vmem:[#allocation7 + $0x20] sm:$0xff] }
  0xf8   : > { %v671_v59 = vadd.f32 %v2392_v35, %v655_v51  ;;  %1275 = vmatpush.bf16.msra.mxu2 %v2502_v1 }
  0xf9   : > { %v873_v0 = vadd.f32 %v857_v10, %v776_v14  ;;  %v1749_v10 = vld [vmem:[#allocation5 + $0x28] sm:$0xff] }
  0xfa   : > { %1149 = vmatpush.bf16.msra.mxu1 %v1749_v10  ;;  %1771 = vmatpush.bf16.msrb.mxu3 %v1749_v10 }
  0xfb   : > { %v799_v13 = vpop.permute.xlu1 %798  ;;  %v893_v27 = vmul.f32 %v2407_v49, %v873_v0  ;;  %v2510_v0 = vld [vmem:[#allocation7 + $0x10] sm:$0xff] }
  0xfc   : > { %v847_v15 = vmul.f32 %v2397_v39, %v799_v13  ;;  %1276 = vmatpush.bf16.msra.mxu2 %v2506_v16 }
  0xfd   : > { %v913_v38 = vadd.f32 %v2418_v56, %v893_v27 }
  0xfe   : > { %v863_v18 = vadd.f32 %v847_v15, %v766_v12  ;;  %v803_v37 = vpop.permute.xlu2 %802  ;;  %1150 = vmatpush.bf16.msra.mxu1 %v1748_v19  ;;  %1772 = vmatpush.bf16.msrb.mxu3 %v1748_v19  ;;  %v811_v22 = vpop.permute.xlu0 %810 }
  0xff   : > { %v929_v43 = vmax.f32 %v913_v38, 0.0  ;;  %v848_v48 = vmul.f32 %v2397_v39, %v803_v37  ;;  %v850_v27 = vmul.f32 %v2397_v39, %v811_v22  ;;  %v2529_v37 = vld [vmem:[#allocation7] sm:$0xff]  ;;  %v2532_v38 = vld [vmem:[%s2527_s8 + $0x8] sm:$0xff] }
 0x100   : > { %v883_v21 = vmul.f32 %v2407_v49, %v863_v18  ;;  %1277 = vmatpush.bf16.msra.mxu2 %v2510_v0 }
 0x102   : > { %v903_v24 = vadd.f32 %v2418_v56, %v883_v21 }
 0x103   : > { %v835_v26 = vpop.permute.xlu1 %834 }
 0x104   : > { %v856_v28 = vmul.f32 %v2397_v39, %v835_v26  ;;  %v919_v30 = vmax.f32 %v903_v24, 0.0 }
 0x106   : > { %v872_v31 = vadd.f32 %v856_v28, %v775_v25  ;;  %v932_v33 = vpack.c.bf16 %v919_v30, %v918_v6  ;;  %v1747_v25 = vld [vmem:[#allocation5 + $0x18] sm:$0xff]  ;;  %v2517_v28 = vld [vmem:[#allocation7 + $0x8] sm:$0xff] }
 0x107   : > { %v615_v52 = vpop.permute.xlu2 %614  ;;  %1151 = vmatpush.bf16.msra.mxu1 %v1747_v25  ;;  %1773 = vmatpush.bf16.msrb.mxu3 %v1747_v25  ;;  %v625_v29 = vpop.permute.xlu0 %624 }
 0x108   : > { %v892_v36 = vmul.f32 %v2407_v49, %v872_v31  ;;  %1024 = vmatmul.bf16.gmra.mxu0 %v932_v33  ;;  %v657_v24 = vmul.f32 %v2385_v32, %v615_v52  ;;  %1278 = vmatpush.bf16.msra.mxu2 %v2517_v28  ;;  %v1746_v33 = vld [vmem:[#allocation5 + $0x10] sm:$0xff]  ;;  %v1744_v52 = vld [vmem:[#allocation5] sm:$0xff] }
 0x10a   : > { %v912_v40 = vadd.f32 %v2418_v56, %v892_v36  ;;  %v673_v6 = vadd.f32 %v2392_v35, %v657_v24  ;;  %v534_v24 = vld [vmem:[%s2527_s8 + $0x28] sm:$0xff] }
 0x10b   : > { %1152 = vmatpush.bf16.msra.mxu1 %v1746_v33  ;;  %1774 = vmatpush.bf16.msrb.mxu3 %v1746_v33 }
 0x10c   : > { %v600_v41 = vpop.permute.xlu1 %599  ;;  %v928_v42 = vmax.f32 %v912_v40, 0.0  ;;  %1279 = vmatpush.bf16.msra.mxu2 %v2529_v37 }
 0x10d   : > { %v654_v44 = vmul.f32 %v2385_v32, %v600_v41 }
 0x10e   : > { %v937_v45 = vpack.c.bf16 %v929_v43, %v928_v42 }
 0x10f   : > { %v670_v47 = vadd.f32 %v2392_v35, %v654_v44  ;;  %v529_v44 = vld [vmem:[%s2527_s8] sm:$0xff] }
 0x110   : > { %1049 = vmatmul.bf16.gmra.mxu3 %v937_v45  ;;  %v718_v7 = vpop.permute.xlu2 %717  ;;  %v1745_v45 = vld [vmem:[#allocation5 + $0x8] sm:$0xff] }
 0x111   : > { %v767_v50 = vadd.f32 %v751_v46, %v670_v47  ;;  %v754_v30 = vmul.f32 %v2387_v34, %v718_v7  ;;  %v1196_v46 = vpack.c.bf16 %v2532_v38, %v529_v44  ;;  %1153 = vmatpush.bf16.msra.mxu1 %v1745_v45  ;;  %1775 = vmatpush.bf16.msrb.mxu3 %v1745_v45  ;;  %v535_v45 = vld [vmem:[%s2527_s8 + $0x30] sm:$0xff] }
 0x113   : > { %v864_v55 = vadd.f32 %v848_v48, %v767_v50  ;;  %v770_v41 = vadd.f32 %v754_v30, %v673_v6  ;;  %v659_v48 = vmul.f32 %v2385_v32, %v625_v29  ;;  %1280 = vmatmul.bf16.vlgmr.msra.gmra.mxu2 %v1196_v46 }
 0x115   : > { %v710_v57 = vpop.permute.xlu1 %709  ;;  %v884_v62 = vmul.f32 %v2407_v49, %v864_v55  ;;  %v675_v55 = vadd.f32 %v2392_v35, %v659_v48  ;;  %1154 = vmatpush.bf16.msra.mxu1 %v1744_v52  ;;  %1776 = vmatpush.bf16.msrb.mxu3 %v1744_v52 }
 0x116   : > { %v752_v60 = vmul.f32 %v2387_v34, %v710_v57 }
 0x117   : > { %v904_v8 = vadd.f32 %v2418_v56, %v884_v62 }
 0x118   : > { %v768_v63 = vadd.f32 %v752_v60, %v671_v59 }
 0x119   : > { %v920_v13 = vmax.f32 %v904_v8, 0.0  ;;  %v620_v18 = vpop.permute.xlu2 %619  ;;  %1777 = vmatpush.bf16.msra.mxu3 %v2487_v54 }
 0x11a   : > { %v865_v3 = vadd.f32 %v849_v61, %v768_v63 }
 0x11c   : > { %v885_v5 = vmul.f32 %v2407_v49, %v865_v3 }
 0x11d   : > { %1778 = vmatpush.bf16.msra.mxu3 %v2490_v58 }
 0x11e   : > { %v610_v11 = vpop.permute.xlu1 %609  ;;  %v905_v12 = vadd.f32 %v2418_v56, %v885_v5  ;;  %v658_v5 = vmul.f32 %v2385_v32, %v620_v18 }
 0x11f   : > { %v656_v17 = vmul.f32 %v2385_v32, %v610_v11 }
 0x120   : > { %v921_v14 = vmax.f32 %v905_v12, 0.0  ;;  %v674_v54 = vadd.f32 %v2392_v35, %v658_v5 }
 0x121   : > { %v672_v21 = vadd.f32 %v2392_v35, %v656_v17  ;;  %1779 = vmatpush.bf16.msra.mxu3 %v2497_v4 }
 0x122   : > { %v933_v15 = vpack.c.bf16 %v921_v14, %v920_v13  ;;  %v726_v36 = vpop.permute.xlu2 %725  ;;  %v532_v14 = vld [vmem:[%s2527_s8 + $0x18] sm:$0xff] }
 0x123   : > { %v756_v53 = vmul.f32 %v2387_v34, %v726_v36  ;;  %v541_v36 = vld [vmem:[%s2527_s8 + $0x60] sm:$0xff] }
 0x124   : > { %1029 = vmatmul.bf16.gmra.mxu0 %v933_v15 }
 0x125   : > { %v772_v63 = vadd.f32 %v756_v53, %v675_v55  ;;  %1780 = vmatpush.bf16.msra.mxu3 %v2502_v1 }
 0x127   : > { %v714_v20 = vpop.permute.xlu1 %713 }
 0x128   : > { %v753_v23 = vmul.f32 %v2387_v34, %v714_v20 }
 0x129   : > { %1781 = vmatpush.bf16.msra.mxu3 %v2506_v16 }
 0x12a   : > { %v769_v26 = vadd.f32 %v753_v23, %v672_v21 }
 0x12b   : > { %v823_v59 = vpop.permute.xlu2 %822 }
 0x12c   : > { %v866_v31 = vadd.f32 %v850_v27, %v769_v26  ;;  %v853_v2 = vmul.f32 %v2397_v39, %v823_v59  ;;  %v533_v26 = vld [vmem:[%s2527_s8 + $0x20] sm:$0xff] }
 0x12d   : > { %1782 = vmatpush.bf16.msra.mxu3 %v2510_v0  ;;  %v1198_v6 = vpack.c.bf16 %v534_v24, %v533_v26 }
 0x12e   : > { %v886_v43 = vmul.f32 %v2407_v49, %v866_v31  ;;  %v869_v8 = vadd.f32 %v853_v2, %v772_v63 }
 0x130   : > { %v815_v40 = vpop.permute.xlu1 %814  ;;  %v906_v51 = vadd.f32 %v2418_v56, %v886_v43  ;;  %v889_v12 = vmul.f32 %v2407_v49, %v869_v8 }
 0x131   : > { %v851_v42 = vmul.f32 %v2397_v39, %v815_v40  ;;  %1783 = vmatpush.bf16.msra.mxu3 %v2517_v28 }
 0x132   : > { %v922_v61 = vmax.f32 %v906_v51, 0.0  ;;  %v909_v10 = vadd.f32 %v2418_v56, %v889_v12  ;;  %v539_v12 = vld [vmem:[%s2527_s8 + $0x50] sm:$0xff] }
 0x133   : > { %v867_v47 = vadd.f32 %v851_v42, %v770_v41 }
 0x134   : > { %v925_v18 = vmax.f32 %v909_v10, 0.0 }
 0x135   : > { %v887_v50 = vmul.f32 %v2407_v49, %v867_v47  ;;  %1784 = vmatpush.bf16.msra.mxu3 %v2529_v37  ;;  %v542_v37 = vld [vmem:[%s2527_s8 + $0x68] sm:$0xff] }
 0x137   : > { %v907_v57 = vadd.f32 %v2418_v56, %v887_v50 }
 0x139   : > { %v722_v60 = vpop.permute.xlu1 %721  ;;  %v923_v62 = vmax.f32 %v907_v57, 0.0  ;;  %v537_v57 = vld [vmem:[%s2527_s8 + $0x40] sm:$0xff] }
 0x13a   : > { %v755_v7 = vmul.f32 %v2387_v34, %v722_v60  ;;  %v531_v34 = vld [vmem:[%s2527_s8 + $0x10] sm:$0xff]  ;;  %v538_v60 = vld [vmem:[%s2527_s8 + $0x48] sm:$0xff] }
 0x13b   : > { %v934_v3 = vpack.c.bf16 %v923_v62, %v922_v61  ;;  %v1197_v35 = vpack.c.bf16 %v532_v14, %v531_v34  ;;  %v543_v61 = vld [vmem:[%s2527_s8 + $0x70] sm:$0xff]  ;;  %v544_v62 = vld [vmem:[%s2527_s8 + $0x78] sm:$0xff]  ;;  %v1200_v2 = vpack.c.bf16 %v538_v60, %v537_v57 }
 0x13c   : > { %v771_v11 = vadd.f32 %v755_v7, %v674_v54 }
 0x13d   : > { %1034 = vmatmul.bf16.gmra.mxu0 %v934_v3  ;;  %1285 = vmatmul.bf16.gmra.mxu2 %v1197_v35 }
 0x142   : > { %v819_v9 = vpop.permute.xlu1 %818 }
 0x143   : > { %v852_v13 = vmul.f32 %v2397_v39, %v819_v9  ;;  %v2565_v39 = vld [vmem:[%s2714_s7] ss:$0 sm:$0xff] }
 0x145   : > { %v868_v58 = vadd.f32 %v852_v13, %v771_v11 }
 0x147   : > { %v888_v32 = vmul.f32 %v2407_v49, %v868_v58  ;;  %v540_v58 = vld [vmem:[%s2527_s8 + $0x58] sm:$0xff] }
 0x149   : > { %v908_v4 = vadd.f32 %v2418_v56, %v888_v32 }
 0x14a   : > { %v1015_v15 = vpop.f32.mrf.mxu0 }
 0x14b   : > { %v924_v17 = vmax.f32 %v908_v4, 0.0  ;;  %v1016_v56 = vadd.f32 %v2565_v39, %v1015_v15  ;;  %v1203_v15 = vpack.c.bf16 %v544_v62, %v543_v61 }
 0x14d   : > { %v935_v49 = vpack.c.bf16 %v925_v18, %v924_v17  ;;  %v1055_v19 = vadd.f32 %v1016_v56, %v529_v44  ;;  %1290 = vmatmul.bf16.gmra.mxu2 %v1198_v6  ;;  %v536_v44 = vld [vmem:[%s2527_s8 + $0x38] sm:$0xff]  ;;  %s2751_s8 = smov %s2750_s24 }
 0x14e   : > { %v1199_v46 = vpack.c.bf16 %v536_v44, %v535_v45  ;;  %s2047_s30 = scalar_lea.hbm %s2751_s8, 512  ;;  %p2048_p7 = scmp.lt.s32.totalorder %s2042_s27, %s2751_s8 }
 0x14f   : > { %1039 = vmatmul.bf16.gmra.mxu0 %v935_v49  ;;  %p2049_p9 = scmp.lt.s32.totalorder %s2047_s30, %s2043_s28 }
 0x151   : > { %p2050_p10 = por %p2049_p9, %p2048_p7 }
 0x152   : > { %v1017_v1 = vpop.f32.mrf.mxu0 }
 0x153   : > { %v1018_v16 = vadd.f32 %v2565_v39, %v1017_v1  ;;  %p2051_p11 = pnand %p2050_p10, %p2046_p6 }
 0x155   : > { %v1056_v20 = vadd.f32 %v1018_v16, %v2532_v38 }
 0x157   : > { %v1071_v0 = vpack.c.bf16 %v1056_v20, %v1055_v19 }
 0x159   : > { %1155 = vmatmul.bf16.vlgmr.msra.gmra.mxu1 %v1071_v0  ;;  %v2599_v0 = vld [vmem:[%s2718_s11] ss:$0 sm:$0xff] }
 0x15d   : > { %1295 = vmatmul.bf16.gmra.mxu2 %v1199_v46 }
 0x161   : > { %v1020_v21 = vpop.f32.mrf.mxu0 }
 0x162   : > { %v1021_v22 = vadd.f32 %v2565_v39, %v1020_v21 }
 0x164   : > { %v1057_v27 = vadd.f32 %v1021_v22, %v531_v34  ;;  %v1202_v34 = vpack.c.bf16 %v542_v37, %v541_v36 }
 0x169   : > { %v1022_v23 = vpop.f32.mrf.mxu0 }
 0x16a   : > { %v1023_v25 = vadd.f32 %v2565_v39, %v1022_v23  ;;  %v2606_v23 = vld [vmem:[%s2716_s9] ss:$0 sm:$0xff] }
 0x16c   : > { %v1058_v28 = vadd.f32 %v1023_v25, %v532_v14  ;;  %v1201_v14 = vpack.c.bf16 %v540_v58, %v539_v12 }
 0x16d   : > { %1300 = vmatmul.bf16.gmra.mxu2 %v1200_v2 }
 0x16e   : > { %v1072_v30 = vpack.c.bf16 %v1058_v28, %v1057_v27 }
 0x16f   : > { %v1045_v31 = vpop.f32.mrf.mxu3 }
 0x170   : > { %1160 = vmatmul.bf16.gmra.mxu1 %v1072_v30  ;;  %v1046_v33 = vadd.f32 %v2565_v39, %v1045_v31 }
 0x172   : > { %v1067_v29 = vadd.f32 %v1046_v33, %v541_v36 }
 0x177   : > { %v1047_v38 = vpop.f32.mrf.mxu3 }
 0x178   : > { %v1048_v40 = vadd.f32 %v2565_v39, %v1047_v38 }
 0x17a   : > { %v1068_v41 = vadd.f32 %v1048_v40, %v542_v37 }
 0x17c   : > { %v1077_v42 = vpack.c.bf16 %v1068_v41, %v1067_v29 }
 0x17d   : > { %1305 = vmatmul.bf16.gmra.mxu2 %v1201_v14 }
 0x17e   : > { %1185 = vmatmul.bf16.vlgmr.msrb.gmra.mxu3 %v1077_v42 }
 0x185   : > { %v1025_v43 = vpop.f32.mrf.mxu0 }
 0x186   : > { %v1026_v47 = vadd.f32 %v2565_v39, %v1025_v43 }
 0x188   : > { %v1059_v51 = vadd.f32 %v1026_v47, %v533_v26 }
 0x18d   : > { %v1027_v48 = vpop.f32.mrf.mxu0 }
 0x18e   : > { %v1028_v50 = vadd.f32 %v2565_v39, %v1027_v48 }
 0x190   : > { %v1060_v52 = vadd.f32 %v1028_v50, %v534_v24 }
 0x192   : > { %v1073_v53 = vpack.c.bf16 %v1060_v52, %v1059_v51 }
 0x193   : > { %v1050_v55 = vpop.f32.mrf.mxu3 }
 0x194   : > { %1165 = vmatmul.bf16.gmra.mxu1 %v1073_v53  ;;  %v1051_v59 = vadd.f32 %v2565_v39, %v1050_v55 }
 0x196   : > { %v1069_v5 = vadd.f32 %v1051_v59, %v543_v61  ;;  %v1281_v20 = vpop.f32.mrf.mxu2 }
 0x197   : > { %v1282_v21 = vadd.f32 %v2599_v0, %v1281_v20 }
 0x199   : > { %v1337_v26 = vpack.c.bf16 %v1282_v21, %v1282_v21 }
 0x19b   : > { %v1052_v63 = vpop.f32.mrf.mxu3  ;;  %v1401_v36 = vunpack.c.l.b16 %v1337_v26 }
 0x19c   : > { %v1053_v3 = vadd.f32 %v2565_v39, %v1052_v63 }
 0x19e   : > { %v1070_v7 = vadd.f32 %v1053_v3, %v544_v62  ;;  %v1283_v28 = vpop.f32.mrf.mxu2 }
 0x19f   : > { %v1284_v38 = vadd.f32 %v2599_v0, %v1283_v28 }
 0x1a0   : > { %v1078_v8 = vpack.c.bf16 %v1070_v7, %v1069_v5 }
 0x1a1   : > { %v1030_v54 = vpop.f32.mrf.mxu0  ;;  %v1338_v41 = vpack.c.bf16 %v1284_v38, %v1284_v38 }
 0x1a2   : > { %1190 = vmatmul.bf16.gmra.mxu3 %v1078_v8  ;;  %v1031_v9 = vadd.f32 %v2565_v39, %v1030_v54 }
 0x1a4   : > { %v1061_v32 = vadd.f32 %v1031_v9, %v535_v45 }
 0x1a9   : > { %v1032_v11 = vpop.f32.mrf.mxu0 }
 0x1aa   : > { %v1033_v13 = vadd.f32 %v2565_v39, %v1032_v11 }
 0x1ac   : > { %v1062_v10 = vadd.f32 %v1033_v13, %v536_v44  ;;  %v1402_v44 = vunpack.c.l.b16 %v1338_v41 }
 0x1ae   : > { %v1074_v4 = vpack.c.bf16 %v1062_v10, %v1061_v32 }
 0x1b0   : > { %1170 = vmatmul.bf16.gmra.mxu1 %v1074_v4 }
 0x1b2   : > { %1310 = vmatmul.bf16.vlgmr.msra.gmra.mxu3 %v1202_v34 }
 0x1ba   : > { %v1035_v35 = vpop.f32.mrf.mxu0 }
 0x1bb   : > { %v1036_v17 = vadd.f32 %v2565_v39, %v1035_v35 }
 0x1bd   : > { %v1063_v56 = vadd.f32 %v1036_v17, %v537_v57 }
 0x1c0   : > { %v1286_v46 = vpop.f32.mrf.mxu2 }
 0x1c1   : > { %v1287_v48 = vadd.f32 %v2599_v0, %v1286_v46 }
 0x1c2   : > { %v1037_v18 = vpop.f32.mrf.mxu0  ;;  %1315 = vmatmul.bf16.gmra.mxu3 %v1203_v15 }
 0x1c3   : > { %v1038_v49 = vadd.f32 %v2565_v39, %v1037_v18  ;;  %v1339_v50 = vpack.c.bf16 %v1287_v48, %v1287_v48 }
 0x1c5   : > { %v1064_v1 = vadd.f32 %v1038_v49, %v538_v60  ;;  %v1403_v57 = vunpack.c.l.b16 %v1339_v50 }
 0x1c7   : > { %v1075_v16 = vpack.c.bf16 %v1064_v1, %v1063_v56 }
 0x1c8   : > { %v1288_v52 = vpop.f32.mrf.mxu2 }
 0x1c9   : > { %1175 = vmatmul.bf16.gmra.mxu1 %v1075_v16  ;;  %v1289_v59 = vadd.f32 %v2599_v0, %v1288_v52 }
 0x1cb   : > { %v1340_v62 = vpack.c.bf16 %v1289_v59, %v1289_v59 }
 0x1cc   : > { %v1040_v19 = vpop.f32.mrf.mxu0 }
 0x1cd   : > { %v1041_v22 = vadd.f32 %v2565_v39, %v1040_v19  ;;  %v1404_v5 = vunpack.c.l.b16 %v1340_v62 }
 0x1cf   : > { %v1065_v6 = vadd.f32 %v1041_v22, %v539_v12 }
 0x1d0   : > { %v1291_v54 = vpop.f32.mrf.mxu2 }
 0x1d1   : > { %v1292_v9 = vadd.f32 %v2599_v0, %v1291_v54 }
 0x1d3   : > { %v1341_v11 = vpack.c.bf16 %v1292_v9, %v1292_v9 }
 0x1d4   : > { %v1042_v24 = vpop.f32.mrf.mxu0 }
 0x1d5   : > { %v1043_v25 = vadd.f32 %v2565_v39, %v1042_v24  ;;  %v1405_v10 = vunpack.c.l.b16 %v1341_v11 }
 0x1d6   : > { %v1156_v27 = vpop.f32.mrf.mxu1 }
 0x1d7   : > { %v1066_v30 = vadd.f32 %v1043_v25, %v540_v58  ;;  %v1157_v31 = vadd.f32 %v2606_v23, %v1156_v27 }
 0x1d8   : > { %v1293_v13 = vpop.f32.mrf.mxu2 }
 0x1d9   : > { %v1321_v33 = vpack.c.bf16 %v1157_v31, %v1157_v31  ;;  %v1076_v37 = vpack.c.bf16 %v1066_v30, %v1065_v6  ;;  %v1294_v34 = vadd.f32 %v2599_v0, %v1293_v13 }
 0x1db   : > { %v1369_v40 = vunpack.c.l.b16 %v1321_v33  ;;  %1180 = vmatmul.bf16.gmra.mxu1 %v1076_v37  ;;  %v1342_v15 = vpack.c.bf16 %v1294_v34, %v1294_v34 }
 0x1dd   : > { %v1417_v29 = vpack.c.b16 %v1401_v36, %v1369_v40  ;;  %v1406_v56 = vunpack.c.l.b16 %v1342_v15 }
 0x1de   : > { %v1158_v39 = vpop.f32.mrf.mxu1 }
 0x1df   : > { %1449 = vst [vmem:[%s2614_s18] sm:$0xff] %v1417_v29  ;;  %v1159_v42 = vadd.f32 %v2606_v23, %v1158_v39 }
 0x1e0   : > { %v1296_v20 = vpop.f32.mrf.mxu2 }
 0x1e1   : > { %v1322_v43 = vpack.c.bf16 %v1159_v42, %v1159_v42  ;;  %v1297_v22 = vadd.f32 %v2599_v0, %v1296_v20 }
 0x1e3   : > { %v1370_v45 = vunpack.c.l.b16 %v1322_v43  ;;  %v1343_v24 = vpack.c.bf16 %v1297_v22, %v1297_v22 }
 0x1e5   : > { %v1418_v47 = vpack.c.b16 %v1402_v44, %v1370_v45  ;;  %v1407_v30 = vunpack.c.l.b16 %v1343_v24 }
 0x1e7   : > { %1450 = vst [vmem:[%s2614_s18 + $0x8] sm:$0xff] %v1418_v47 }
 0x1e8   : > { %v1298_v25 = vpop.f32.mrf.mxu2 }
 0x1e9   : > { %v1299_v31 = vadd.f32 %v2599_v0, %v1298_v25 }
 0x1eb   : > { %v1344_v38 = vpack.c.bf16 %v1299_v31, %v1299_v31 }
 0x1ed   : > { %v1161_v51 = vpop.f32.mrf.mxu1  ;;  %v1408_v44 = vunpack.c.l.b16 %v1344_v38 }
 0x1ee   : > { %v1162_v53 = vadd.f32 %v2606_v23, %v1161_v51 }
 0x1f0   : > { %v1323_v55 = vpack.c.bf16 %v1162_v53, %v1162_v53  ;;  %v1301_v53 = vpop.f32.mrf.mxu2 }
 0x1f2   : > { %v1371_v60 = vunpack.c.l.b16 %v1323_v55 }
 0x1f4   : > { %v1419_v61 = vpack.c.b16 %v1403_v57, %v1371_v60 }
 0x1f5   : > { %v1163_v63 = vpop.f32.mrf.mxu1 }
 0x1f6   : > { %1451 = vst [vmem:[%s2614_s18 + $0x10] sm:$0xff] %v1419_v61  ;;  %v1164_v2 = vadd.f32 %v2606_v23, %v1163_v63  ;;  %v1302_v61 = vadd.f32 %v2599_v0, %v1301_v53 }
 0x1f8   : > { %v1324_v3 = vpack.c.bf16 %v1164_v2, %v1164_v2  ;;  %v1303_v11 = vpop.f32.mrf.mxu2 }
 0x1fa   : > { %v1372_v7 = vunpack.c.l.b16 %v1324_v3 }
 0x1fc   : > { %v1420_v8 = vpack.c.b16 %v1404_v5, %v1372_v7  ;;  %v1345_v5 = vpack.c.bf16 %v1302_v61, %v1302_v61 }
 0x1fe   : > { %1452 = vst [vmem:[%s2614_s18 + $0x18] sm:$0xff] %v1420_v8 }
 0x201   : > { %v1186_v14 = vpop.f32.mrf.mxu3 }
 0x202   : > { %v1187_v33 = vadd.f32 %v2606_v23, %v1186_v14 }
 0x204   : > { %v1333_v41 = vpack.c.bf16 %v1187_v33, %v1187_v33 }
 0x206   : > { %v1381_v46 = vunpack.c.l.b16 %v1333_v41 }
 0x209   : > { %v1188_v1 = vpop.f32.mrf.mxu3 }
 0x20a   : > { %v1189_v47 = vadd.f32 %v2606_v23, %v1188_v1 }
 0x20c   : > { %v1334_v57 = vpack.c.bf16 %v1189_v47, %v1189_v47 }
 0x20e   : > { %v1382_v62 = vunpack.c.l.b16 %v1334_v57 }
 0x211   : > { %v1166_v12 = vpop.f32.mrf.mxu1 }
 0x212   : > { %v1167_v58 = vadd.f32 %v2606_v23, %v1166_v12 }
 0x214   : > { %v1325_v32 = vpack.c.bf16 %v1167_v58, %v1167_v58  ;;  %v1409_v58 = vunpack.c.l.b16 %v1345_v5 }
 0x216   : > { %v1373_v4 = vunpack.c.l.b16 %v1325_v32 }
 0x218   : > { %v1421_v35 = vpack.c.b16 %v1405_v10, %v1373_v4 }
 0x219   : > { %v1168_v17 = vpop.f32.mrf.mxu1 }
 0x21a   : > { %1453 = vst [vmem:[%s2614_s18 + $0x20] sm:$0xff] %v1421_v35  ;;  %v1169_v18 = vadd.f32 %v2606_v23, %v1168_v17  ;;  %v1304_v35 = vadd.f32 %v2599_v0, %v1303_v11 }
 0x21c   : > { %v1326_v49 = vpack.c.bf16 %v1169_v18, %v1169_v18 }
 0x21e   : > { %v1374_v16 = vunpack.c.l.b16 %v1326_v49 }
 0x220   : > { %v1422_v19 = vpack.c.b16 %v1406_v56, %v1374_v16  ;;  %v1346_v16 = vpack.c.bf16 %v1304_v35, %v1304_v35 }
 0x222   : > { %1454 = vst [vmem:[%s2614_s18 + $0x28] sm:$0xff] %v1422_v19 }
 0x225   : > { %v1191_v21 = vpop.f32.mrf.mxu3 }
 0x226   : > { %v1192_v63 = vadd.f32 %v2606_v23, %v1191_v21  ;;  %v1306_v21 = vpop.f32.mrf.mxu2 }
 0x228   : > { %v1335_v8 = vpack.c.bf16 %v1192_v63, %v1192_v63 }
 0x22a   : > { %v1383_v32 = vunpack.c.l.b16 %v1335_v8 }
 0x22d   : > { %v1171_v26 = vpop.f32.mrf.mxu1  ;;  %v1193_v27 = vpop.f32.mrf.mxu3 }
 0x22e   : > { %v1172_v28 = vadd.f32 %v2606_v23, %v1171_v26  ;;  %v1194_v10 = vadd.f32 %v2606_v23, %v1193_v27  ;;  %v1410_v26 = vunpack.c.l.b16 %v1346_v16 }
 0x230   : > { %v1327_v6 = vpack.c.bf16 %v1172_v28, %v1172_v28  ;;  %v1336_v49 = vpack.c.bf16 %v1194_v10, %v1194_v10  ;;  %v1307_v28 = vadd.f32 %v2599_v0, %v1306_v21 }
 0x232   : > { %v1375_v36 = vunpack.c.l.b16 %v1327_v6  ;;  %v1384_v24 = vunpack.c.l.b16 %v1336_v49  ;;  %v1347_v31 = vpack.c.bf16 %v1307_v28, %v1307_v28 }
 0x234   : > { %v1423_v37 = vpack.c.b16 %v1407_v30, %v1375_v36  ;;  %v1411_v38 = vunpack.c.l.b16 %v1347_v31 }
 0x235   : > { %v1173_v40 = vpop.f32.mrf.mxu1  ;;  %v1311_v29 = vpop.f32.mrf.mxu3 }
 0x236   : > { %1455 = vst [vmem:[%s2614_s18 + $0x30] sm:$0xff] %v1423_v37  ;;  %v1174_v39 = vadd.f32 %v2606_v23, %v1173_v40  ;;  %v1312_v42 = vadd.f32 %v2599_v0, %v1311_v29  ;;  %v1308_v37 = vpop.f32.mrf.mxu2 }
 0x237   : > { %v1309_v41 = vadd.f32 %v2599_v0, %v1308_v37 }
 0x238   : > { %v1328_v43 = vpack.c.bf16 %v1174_v39, %v1174_v39  ;;  %v1349_v45 = vpack.c.bf16 %v1312_v42, %v1312_v42 }
 0x23a   : > { %v1376_v48 = vunpack.c.l.b16 %v1328_v43  ;;  %v1413_v50 = vunpack.c.l.b16 %v1349_v45  ;;  %v1348_v43 = vpack.c.bf16 %v1309_v41, %v1309_v41 }
 0x23c   : > { %v1424_v51 = vpack.c.b16 %v1408_v44, %v1376_v48  ;;  %v1429_v52 = vpack.c.b16 %v1413_v50, %v1381_v46  ;;  %v1412_v46 = vunpack.c.l.b16 %v1348_v43 }
 0x23d   : > { %v1313_v55 = vpop.f32.mrf.mxu3 }
 0x23e   : > { %1456 = vst [vmem:[%s2614_s18 + $0x38] sm:$0xff] %v1424_v51  ;;  %v1314_v59 = vadd.f32 %v2599_v0, %v1313_v55 }
 0x23f   : > { %1461 = vst [vmem:[%s2614_s18 + $0x60] sm:$0xff] %v1429_v52 }
 0x240   : > { %v1350_v60 = vpack.c.bf16 %v1314_v59, %v1314_v59 }
 0x242   : > { %v1414_v2 = vunpack.c.l.b16 %v1350_v60 }
 0x244   : > { %v1430_v3 = vpack.c.b16 %v1414_v2, %v1382_v62 }
 0x245   : > { %v1316_v7 = vpop.f32.mrf.mxu3 }
 0x246   : > { %1462 = vst [vmem:[%s2614_s18 + $0x68] sm:$0xff] %v1430_v3  ;;  %v1317_v54 = vadd.f32 %v2599_v0, %v1316_v7  ;;  %v1176_v9 = vpop.f32.mrf.mxu1 }
 0x247   : > { %v1177_v12 = vadd.f32 %v2606_v23, %v1176_v9 }
 0x248   : > { %v1351_v13 = vpack.c.bf16 %v1317_v54, %v1317_v54 }
 0x249   : > { %v1329_v14 = vpack.c.bf16 %v1177_v12, %v1177_v12 }
 0x24a   : > { %v1415_v34 = vunpack.c.l.b16 %v1351_v13 }
 0x24b   : > { %v1377_v4 = vunpack.c.l.b16 %v1329_v14 }
 0x24c   : > { %v1431_v15 = vpack.c.b16 %v1415_v34, %v1383_v32 }
 0x24d   : > { %v1425_v17 = vpack.c.b16 %v1409_v58, %v1377_v4  ;;  %v1318_v18 = vpop.f32.mrf.mxu3 }
 0x24e   : > { %1463 = vst [vmem:[%s2614_s18 + $0x70] sm:$0xff] %v1431_v15  ;;  %v1319_v56 = vadd.f32 %v2599_v0, %v1318_v18  ;;  %v1178_v1 = vpop.f32.mrf.mxu1 }
 0x24f   : > { %1457 = vst [vmem:[%s2614_s18 + $0x40] sm:$0xff] %v1425_v17  ;;  %v1179_v19 = vadd.f32 %v2606_v23, %v1178_v1 }
 0x250   : > { %v1352_v20 = vpack.c.bf16 %v1319_v56, %v1319_v56 }
 0x251   : > { %v1330_v22 = vpack.c.bf16 %v1179_v19, %v1179_v19 }
 0x252   : > { %v1416_v25 = vunpack.c.l.b16 %v1352_v20 }
 0x253   : > { %v1378_v27 = vunpack.c.l.b16 %v1330_v22 }
 0x254   : > { %v1432_v6 = vpack.c.b16 %v1416_v25, %v1384_v24 }
 0x255   : > { %v1426_v30 = vpack.c.b16 %v1410_v26, %v1378_v27 }
 0x256   : > { %1464 = vst [vmem:[%s2614_s18 + $0x78] sm:$0xff] %v1432_v6 }
 0x257   : > { %1458 = vst [vmem:[%s2614_s18 + $0x48] sm:$0xff] %v1426_v30 }
 0x258   : > { %v1181_v33 = vpop.f32.mrf.mxu1 }
 0x259   : > { %v1182_v36 = vadd.f32 %v2606_v23, %v1181_v33 }
 0x25b   : > { %v1331_v40 = vpack.c.bf16 %v1182_v36, %v1182_v36 }
 0x25d   : > { %v1379_v29 = vunpack.c.l.b16 %v1331_v40 }
 0x25f   : > { %v1427_v39 = vpack.c.b16 %v1411_v38, %v1379_v29 }
 0x260   : > { %v1183_v42 = vpop.f32.mrf.mxu1 }
 0x261   : > { %1459 = vst [vmem:[%s2614_s18 + $0x50] sm:$0xff] %v1427_v39  ;;  %v1184_v44 = vadd.f32 %v2606_v23, %v1183_v42 }
 0x263   : > { %v1332_v45 = vpack.c.bf16 %v1184_v44, %v1184_v44 }
 0x265   : > { %v1380_v47 = vunpack.c.l.b16 %v1332_v45 }
 0x267   : > { %v1428_v0 = vpack.c.b16 %v1412_v46, %v1380_v47 }
 0x269   : > { %1460 = vst [vmem:[%s2614_s18 + $0x58] sm:$0xff] %v1428_v0 }
 0x26a   : > { %2054 = shalt.err (!%p2051_p11)
}
 0x26b   : > { %s2139_s14 = smov 128   ;;  %s2140_s18 = smov 8  }
 0x26c   : > { %1797 = dma.vmem_to_hbm [thread:$0]  (%p2258_p3), %s1482_s12, 2048, %s1484_s21, %s1466_s26, %s2139_s14, %s2139_s14, %s2140_s18  }
 0x26d PF: > { %s2753_s16 = sld [smem:[#allocation16_spill]] }
 0x26e   : > { %s2754_s19 = sld [smem:[#allocation12_spill]] }
 0x273   : > { %p1819_p12 = scmp.ge.s32.totalorder %s2753_s16, 2 }
 0x274   : > { %s1498_s24 = sand.u32 1, %s2754_s19  }
 0x275   : > { %p1810_p13 = pnand %p1819_p12, %p2267_p8  ;;  %s1499_s25 = scalar_lea.sflag [#allocation4], %s1498_s24 }
 0x277   : > { %p1811_p0 = pneg %p1810_p13 }
 0x279   : > { %2096 = dma.done.wait (%p1811_p0), %s1499_s25, 2048  }
 0x27a   : > { %2098 = vsyncadd (%p1811_p0), %s1499_s25, 4294965248  ;;  %s27_s28 = sadd.s32 1, %s2753_s16   ;;  %s2756_s27 = sld [smem:[#allocation13_spill]] }
 0x27b   : > { %p24_p1 = scmp.ge.s32.totalorder %s27_s28, 6   ;;  %s2757_s23 = sld [smem:[#allocation21_spill]] }
 0x27c   : > { %s2758_s24 = sld [smem:[#allocation14_spill]]  ;;  %s2762_s21 = smov %s2105_s22 }
 0x27d   : > { %s2759_s25 = sld [smem:[#allocation15_spill]] }
 0x27e   : > { %s2760_s26 = sld [smem:[#allocation17_spill]] }
 0x27f   : > { %s2761_s12 = sld [smem:[#allocation19_spill]] }
 0x280   : > { %s2763_s22 = smov %s2756_s27 }
 0x281   :  { %26 = sbr.rel (!%p24_p1) target bundleno = 10 (0xa), region = 119 }
 0x285   : > { %s2764_s27 = smov %s2761_s12 }
 0x286   :  { %1505 = vsyncpa [#allocation3], 1 }
 0x287   :  { %1507 = vsyncpa [#allocation3 + $0x1], 1 }
 0x288   :  { %1508 = vsyncpa [#allocation6], 1 }
 0x289   :  { %1509 = vsyncpa [#allocation4], 1 }
 0x28a   :  { %1511 = vsyncpa [#allocation4 + $0x1], 1 }

</bundles_post_ra>
